<compile_context>
chip_gen: v7x
topology: tpu7x:2x2x1
jax: 0.10.0
libtpu: 0.0.40
codegen_flags: <defaults>
</compile_context>

<pallas_src>
import functools

import jax
import jax.numpy as jnp
from jax import lax
from jax.experimental import pallas as pl
from jax.experimental.pallas import tpu as pltpu


# ---------------------------------------------------------------------------
# In-kernel building blocks (operate on traced VMEM/vreg-resident values)
# ---------------------------------------------------------------------------

_TAP_OFFSETS = tuple((dh, dw) for dh in (-1, 0, 1) for dw in (-1, 0, 1))


def _tap_masks(m, hh, ww):
    """Boundary-validity masks, shape (1, m) bool, for each 3x3 tap offset.

    Flat layout is sample-major then row-major: lane = s*H*W + y*W + x.
    Uses bit ops only (requires W and H*W to be powers of two).
    """
    lane = lax.broadcasted_iota(jnp.int32, (1, m), 1)
    w_shift = ww.bit_length() - 1
    y = jnp.bitwise_and(lane, hh * ww - 1) >> w_shift
    x = jnp.bitwise_and(lane, ww - 1)
    row = {-1: y >= 1, 0: None, 1: y <= hh - 2}
    col = {-1: x >= 1, 0: None, 1: x <= ww - 2}
    masks = {}
    for dh in (-1, 0, 1):
        for dw in (-1, 0, 1):
            r, c = row[dh], col[dw]
            if r is None:
                masks[(dh, dw)] = c
            elif c is None:
                masks[(dh, dw)] = r
            else:
                masks[(dh, dw)] = jnp.logical_and(r, c)
    return masks


def _conv3x3_flat(x, w_ref, ww, masks):
    """3x3 / stride-1 / pad-1 conv on a flat-spatial activation (no bias).

    x:      (Cin, M) f32, M = B*H*W, sample-major/row-major flat layout.
    w_ref:  (9, Cout, Cin) bf16 ref, tap-major (t = kh*3 + kw).
    masks:  {(dh, dw): (1, M) bool or None} boundary masks.
    Returns (Cout, M) f32.  Taps are XLU rolls + masks (no padded / patch
    tensor); each tap is one small bf16 MXU matmul accumulated in f32.
    """
    m = x.shape[-1]
    acc = None
    for t, (dh, dw) in enumerate(_TAP_OFFSETS):
        off = dh * ww + dw                     # tap[i] = x[i + off] (masked)
        tap = x if off == 0 else pltpu.roll(x, shift=(-off) % m, axis=1)
        msk = masks[(dh, dw)]
        if msk is not None:
            tap = jnp.where(msk, tap, 0.0)
        part = jnp.dot(w_ref[t], tap.astype(jnp.bfloat16),
                       preferred_element_type=jnp.float32)
        acc = part if acc is None else acc + part
    return acc


# ---------------------------------------------------------------------------
# Fused encoder kernel: one grid step == B samples (stacked along lanes)
# ---------------------------------------------------------------------------

def _encoder_kernel(comp_id_ref,                               # SMEM (scalar prefetch)
                    x_ref, w1_ref, b1_ref, cb_ref,
                    w2_ref, b2_ref, w3_ref, b3_ref,
                    sel2_ref, sel3_ref,
                    skip_ref, last_ref,
                    *, hh, ww, bsz, apply_sigmoid):
    hs, ws = hh // 2, ww // 2
    m1 = bsz * hh * ww
    m2 = bsz * hs * ws
    step = pl.program_id(0)

    x = x_ref[...]                                             # (Cin, M1) f32, lane-dense

    masks_full = _tap_masks(m1, hh, ww)                        # shared by conv1 & conv2
    masks_half = _tap_masks(m2, hs, ws)

    # ---- body: Conv(s=1) -> ReLU -> ComponentConditionBlock -----------------
    a = _conv3x3_flat(x, w1_ref, ww, masks_full) + b1_ref[...]   # (C1, M1)
    a = jnp.maximum(a, 0.0)

    # Per-sample per-channel component bias via a tiny one-hot matmul:
    #   comp-of-lane (1, M1) -> one-hot (n_comps, M1);  (C1, n_comps) @ one-hot.
    lane = lax.broadcasted_iota(jnp.int32, (1, m1), 1)
    hw_shift = (hh * ww).bit_length() - 1
    sample_of_lane = lane >> hw_shift                          # (1, M1)
    comp_of_lane = jnp.zeros((1, m1), jnp.int32)
    for b in range(bsz):
        cid = comp_id_ref[step * bsz + b]                      # scalar from SMEM
        comp_of_lane = jnp.where(sample_of_lane == b, cid, comp_of_lane)
    n_comps = cb_ref.shape[1]
    onehot = (lax.broadcasted_iota(jnp.int32, (n_comps, 1), 0)
              == comp_of_lane).astype(jnp.float32)             # (n_comps, M1)
    a = a + jnp.dot(cb_ref[...], onehot, preferred_element_type=jnp.float32)

    # ---- head: Conv(s=2) -> ReLU (skip),  Conv(s=2) (last) ------------------
    # Stride-2/pad-1 conv == stride-1 same-conv sampled at even (y, x); the
    # sampling is an exact 0/1 selection matmul in f32.
    h_full = _conv3x3_flat(a, w2_ref, ww, masks_full)                      # (C2, M1)
    h = jnp.dot(h_full, sel2_ref[...], preferred_element_type=jnp.float32) # (C2, M2)
    h = jnp.maximum(h + b2_ref[...], 0.0)                                  # skip feature

    g_full = _conv3x3_flat(h, w3_ref, ws, masks_half)                      # (C3, M2)
    g = jnp.dot(g_full, sel3_ref[...], preferred_element_type=jnp.float32) # (C3, M3)
    g = g + b3_ref[...]

    skip_out, last_out = h, g
    if apply_sigmoid:
        skip_out = jax.nn.sigmoid(skip_out)
        last_out = jax.nn.sigmoid(last_out)

    skip_ref[...] = skip_out.astype(skip_ref.dtype)
    last_ref[...] = last_out.astype(last_ref.dtype)


# ---------------------------------------------------------------------------
# Wrapper (PyTorch-style NCHW / OIHW in, NCHW out)
# ---------------------------------------------------------------------------

def _prep_conv_weight(w_oihw):
    """(Cout, Cin, 3, 3) OIHW -> (9, Cout, Cin) bf16, tap index t = kh*3 + kw."""
    cout, cin, kh, kw = w_oihw.shape
    w = jnp.asarray(w_oihw, jnp.float32)
    return jnp.transpose(w, (2, 3, 0, 1)).reshape(kh * kw, cout, cin).astype(jnp.bfloat16)


def _make_stride2_selection(bsz, hh, ww):
    """0/1 matrix (B*H*W, B*(H/2)*(W/2)): column j picks the even-(y,x) full-res
    position that equals stride-2/pad-1 conv output j."""
    hs, ws = hh // 2, ww // 2
    m_in, m_out = bsz * hh * ww, bsz * hs * ws
    j = jnp.arange(m_out, dtype=jnp.int32)
    smp = j // (hs * ws)
    jo = j % (hs * ws)
    yo, xo = jo // ws, jo % ws
    src = smp * (hh * ww) + (2 * yo) * ww + (2 * xo)
    i = jnp.arange(m_in, dtype=jnp.int32)
    return (i[:, None] == src[None, :]).astype(jnp.float32)


def _pick_sample_block(n, hh, ww):
    """Samples per grid step (stacked along the lane/M axis).

    B == n (single step) is always legal; otherwise B must keep every output
    block a multiple of 128 lanes.  Prefers >= 2 steps when n is large so
    dimension_semantics=('parallel',) can split work across TensorCores.
    """
    hw_skip = (hh // 2) * (ww // 2)
    hw_last = (hh // 4) * (ww // 4)
    for b in (64, 32, 16, 8):
        if (n % b == 0 and n // b >= 2
                and (b * hw_skip) % 128 == 0 and (b * hw_last) % 128 == 0):
            return b
    return n


class ComponentEncoderPallas:
    """Fused Pallas implementation of ComponentEncoder for the architecture above."""

    def __init__(self, body, head, final_shape, skip_shape,
                 sigmoid=False, skip_layer_idx=None):
        (t1, w1, b1, s1), (t1r,), (t1c, comp_bias) = body
        (t2, w2, b2, s2), (t2r,), (t3, w3, b3, s3) = head
        if not (t1 == t2 == t3 == "conv" and t1r == t2r == "relu" and t1c == "comp_block"):
            raise ValueError("unexpected body/head structure for the fused kernel")
        if not (s1 == 1 and s2 == 2 and s3 == 2 and skip_layer_idx == 1):
            raise ValueError("fused kernel is specialized to strides (1,2,2), skip after head ReLU")

        self.sigmoid = bool(sigmoid)
        self.final_shape = final_shape
        self.skip_shape = skip_shape
        self.n_comps = comp_bias.shape[0]
        self.cin = w1.shape[1]
        self.c1, self.c2, self.c3 = w1.shape[0], w2.shape[0], w3.shape[0]

        # Pre-flatten / pre-cast parameters once (tiny, outside the hot path).
        self.w1 = _prep_conv_weight(w1)            # (9, C1, Cin) bf16
        self.w2 = _prep_conv_weight(w2)            # (9, C2, C1)  bf16
        self.w3 = _prep_conv_weight(w3)            # (9, C3, C2)  bf16
        self.b1 = jnp.asarray(b1, jnp.float32).reshape(-1, 1)
        self.b2 = jnp.asarray(b2, jnp.float32).reshape(-1, 1)
        self.b3 = jnp.asarray(b3, jnp.float32).reshape(-1, 1)
        # ComponentConditionBlock bias: (n_comps, C, 1, 1) -> (C, n_comps); applied
        # in-kernel as (C, n_comps) @ one-hot(n_comps, M).
        self.cb = jnp.asarray(comp_bias, jnp.float32).reshape(self.n_comps, self.c1).T

    def __call__(self, x_nchw, comp_id=None):
        if comp_id is None:
            raise ValueError("comp_id is required by ComponentConditionBlock")
        n, cin, hh, ww = x_nchw.shape
        assert cin == self.cin and hh % 4 == 0 and ww % 4 == 0
        # Kernel index/mask math uses bit ops (the encoder's 16x16 input satisfies this).
        assert (ww & (ww - 1)) == 0 and ((hh * ww) & (hh * ww - 1)) == 0
        hs, ws = hh // 2, ww // 2
        hq, wq = hh // 4, ww // 4
        bsz = _pick_sample_block(n, hh, ww)
        grid = n // bsz
        m1, m2, m3 = bsz * hh * ww, bsz * hs * ws, bsz * hq * wq

        # Clamp comp ids so a bad id can never index out of the bias table.
        comp_id = jnp.clip(jnp.asarray(comp_id, jnp.int32).reshape(-1), 0, self.n_comps - 1)

        # Layout plumbing (wrapper side only): x.repeat((1,1,1,1)) is a no-op;
        # NCHW -> channel-major with all samples stacked along the flat spatial
        # (lane) axis: (Cin, N*H*W).
        x_cm = jnp.transpose(jnp.asarray(x_nchw, jnp.float32).reshape(n, cin, hh * ww),
                             (1, 0, 2)).reshape(cin, n * hh * ww)

        sel2 = _make_stride2_selection(bsz, hh, ww)     # (m1, m2) f32 0/1
        sel3 = _make_stride2_selection(bsz, hs, ws)     # (m2, m3) f32 0/1

        kernel = functools.partial(_encoder_kernel, hh=hh, ww=ww, bsz=bsz,
                                   apply_sigmoid=self.sigmoid)

        skip_cm, last_cm = pl.pallas_call(
            kernel,
            out_shape=(jax.ShapeDtypeStruct((self.c2, n * hs * ws), jnp.float32),
                       jax.ShapeDtypeStruct((self.c3, n * hq * wq), jnp.float32)),
            grid_spec=pltpu.PrefetchScalarGridSpec(
                num_scalar_prefetch=1,                  # comp_id -> SMEM
                grid=(grid,),                           # one step per B-sample block
                in_specs=[
                    pl.BlockSpec((cin, m1), lambda i, cid: (0, i)),
                    pl.BlockSpec(self.w1.shape, lambda i, cid: (0, 0, 0)),
                    pl.BlockSpec(self.b1.shape, lambda i, cid: (0, 0)),
                    pl.BlockSpec(self.cb.shape, lambda i, cid: (0, 0)),
                    pl.BlockSpec(self.w2.shape, lambda i, cid: (0, 0, 0)),
                    pl.BlockSpec(self.b2.shape, lambda i, cid: (0, 0)),
                    pl.BlockSpec(self.w3.shape, lambda i, cid: (0, 0, 0)),
                    pl.BlockSpec(self.b3.shape, lambda i, cid: (0, 0)),
                    pl.BlockSpec((m1, m2), lambda i, cid: (0, 0)),
                    pl.BlockSpec((m2, m3), lambda i, cid: (0, 0)),
                ],
                out_specs=(
                    pl.BlockSpec((self.c2, m2), lambda i, cid: (0, i)),
                    pl.BlockSpec((self.c3, m3), lambda i, cid: (0, i)),
                ),
            ),
            compiler_params=pltpu.CompilerParams(
                dimension_semantics=("parallel",)),     # sample blocks are independent
        )(comp_id, x_cm, self.w1, self.b1, self.cb,
          self.w2, self.b2, self.w3, self.b3, sel2, sel3)

        skip = jnp.transpose(skip_cm.reshape(self.c2, n, hs, ws), (1, 0, 2, 3))
        last = jnp.transpose(last_cm.reshape(self.c3, n, hq, wq), (1, 0, 2, 3))
        return {"skip": skip, "last": last}


# ---------------------------------------------------------------------------
# Pure-JAX reference (mirrors the PyTorch module) for a correctness check
# ---------------------------------------------------------------------------

def reference_forward(x, comp_id, body, head, sigmoid=True):
    (_, w1, b1, s1), _, (_, cb) = body
    (_, w2, b2, s2), _, (_, w3, b3, s3) = head

    def conv(t, wgt, bias, s):
        y = lax.conv_general_dilated(t, wgt, (s, s), ((1, 1), (1, 1)),
                                     dimension_numbers=("NCHW", "OIHW", "NCHW"))
        return y + bias.reshape(1, -1, 1, 1)

    a = jnp.maximum(conv(x, w1, b1, s1), 0.0)
    a = a + cb[comp_id]                       # ComponentConditionBlock
    hfeat = jnp.maximum(conv(a, w2, b2, s2), 0.0)
    gfeat = conv(hfeat, w3, b3, s3)
    skip, last = hfeat, gfeat
    if sigmoid:
        skip, last = jax.nn.sigmoid(skip), jax.nn.sigmoid(last)
    return {"skip": skip, "last": last}


# ---------------------------------------------------------------------------
# Main
# ---------------------------------------------------------------------------

if __name__ == "__main__":
    key = jax.random.PRNGKey(0)
    kx, k1, kb1, kc, k2, kb2, k3, kb3 = jax.random.split(key, 8)

    N, Cin, H, W = 2, 4, 16, 16
    C1 = C2 = C3 = 8
    n_comps = 3

    body_w = jax.random.normal(k1, (C1, Cin, 3, 3), jnp.float32) * 0.1
    body_b = jax.random.normal(kb1, (C1,), jnp.float32) * 0.1
    comp_bias = jax.random.normal(kc, (n_comps, C1, 1, 1), jnp.float32) * 0.05
    head_w1 = jax.random.normal(k2, (C2, C1, 3, 3), jnp.float32) * 0.1
    head_b1 = jax.random.normal(kb2, (C2,), jnp.float32) * 0.1
    head_w2 = jax.random.normal(k3, (C3, C2, 3, 3), jnp.float32) * 0.1
    head_b2 = jax.random.normal(kb3, (C3,), jnp.float32) * 0.1

    body = [("conv", body_w, body_b, 1), ("relu",), ("comp_block", comp_bias)]
    head = [("conv", head_w1, head_b1, 2), ("relu",), ("conv", head_w2, head_b2, 2)]

    encoder = ComponentEncoderPallas(
        body, head,
        final_shape=(C3, 4, 4), skip_shape=(C2, 8, 8),
        sigmoid=True, skip_layer_idx=1)

    x = jax.random.normal(kx, (N, Cin, H, W), jnp.float32)    # PyTorch NCHW input
    comp_id = jnp.array([0, 2], dtype=jnp.int32)              # per-sample component id

    fwd = jax.jit(lambda xx, cc: encoder(xx, cc))
    out = fwd(x, comp_id)
    jax.block_until_ready(out)

    assert out["skip"].shape == (N, C2, H // 2, W // 2), out["skip"].shape
    assert out["last"].shape == (N, C3, H // 4, W // 4), out["last"].shape
    assert bool(jnp.all((out["skip"] >= 0) & (out["skip"] <= 1)))
    assert bool(jnp.all((out["last"] >= 0) & (out["last"] <= 1)))

    ref = reference_forward(x, comp_id, body, head, sigmoid=True)
    for name in ("skip", "last"):
        err = float(jnp.max(jnp.abs(out[name] - ref[name])))
        assert err < 2e-2, (name, err)

    print("KERNEL_OK")
</pallas_src>

<mosaic_0001>
module attributes {stable_mosaic.version = 11 : i64} {
  func.func @_encoder_kernel(%arg0: i32, %arg1: memref<2xi32, #tpu.memory_space<smem>>, %arg2: memref<4x512xf32, #tpu.memory_space<vmem>>, %arg3: memref<9x8x4xbf16, #tpu.memory_space<vmem>>, %arg4: memref<8x1xf32, #tpu.memory_space<vmem>>, %arg5: memref<8x3xf32, #tpu.memory_space<vmem>>, %arg6: memref<9x8x8xbf16, #tpu.memory_space<vmem>>, %arg7: memref<8x1xf32, #tpu.memory_space<vmem>>, %arg8: memref<9x8x8xbf16, #tpu.memory_space<vmem>>, %arg9: memref<8x1xf32, #tpu.memory_space<vmem>>, %arg10: memref<512x128xf32, #tpu.memory_space<vmem>>, %arg11: memref<128x32xf32, #tpu.memory_space<vmem>>, %arg12: memref<8x128xf32, #tpu.memory_space<vmem>>, %arg13: memref<8x32xf32, #tpu.memory_space<vmem>>) attributes {dimension_semantics = [#tpu.dimension_semantics<parallel>], iteration_bounds = array<i64: 1>, scalar_prefetch = 1 : i64, scratch_operands = 0 : i64, tpu.core_type = #tpu.core_type<tc>, window_params = [{transform_indices = @transform_0, window_bounds = array<i64: 4, 512>}, {pipeline_mode = #tpu.pipeline_mode<synchronous>, transform_indices = @transform_1, window_bounds = array<i64: 9, 8, 4>}, {pipeline_mode = #tpu.pipeline_mode<synchronous>, transform_indices = @transform_2, window_bounds = array<i64: 8, 1>}, {pipeline_mode = #tpu.pipeline_mode<synchronous>, transform_indices = @transform_3, window_bounds = array<i64: 8, 3>}, {pipeline_mode = #tpu.pipeline_mode<synchronous>, transform_indices = @transform_4, window_bounds = array<i64: 9, 8, 8>}, {pipeline_mode = #tpu.pipeline_mode<synchronous>, transform_indices = @transform_5, window_bounds = array<i64: 8, 1>}, {pipeline_mode = #tpu.pipeline_mode<synchronous>, transform_indices = @transform_6, window_bounds = array<i64: 9, 8, 8>}, {pipeline_mode = #tpu.pipeline_mode<synchronous>, transform_indices = @transform_7, window_bounds = array<i64: 8, 1>}, {pipeline_mode = #tpu.pipeline_mode<synchronous>, transform_indices = @transform_8, window_bounds = array<i64: 512, 128>}, {pipeline_mode = #tpu.pipeline_mode<synchronous>, transform_indices = @transform_9, window_bounds = array<i64: 128, 32>}, {transform_indices = @transform_10, window_bounds = array<i64: 8, 128>}, {transform_indices = @transform_11, window_bounds = array<i64: 8, 32>}]} {
    %c0 = arith.constant 0 : index
    %c0_0 = arith.constant 0 : index
    %0 = vector.load %arg2[%c0, %c0_0] : memref<4x512xf32, #tpu.memory_space<vmem>>, vector<4x512xf32>
    %1 = tpu.iota {dimensions = array<i32: 1>} : vector<1x512xi32>
    %c255_i32 = arith.constant 255 : i32
    %2 = vector.broadcast %c255_i32 : i32 to vector<1x512xi32>
    %3 = arith.andi %1, %2 : vector<1x512xi32>
    %c4_i32 = arith.constant 4 : i32
    %4 = vector.broadcast %c4_i32 : i32 to vector<1x512xi32>
    %5 = arith.shrsi %3, %4 : vector<1x512xi32>
    %c15_i32 = arith.constant 15 : i32
    %6 = vector.broadcast %c15_i32 : i32 to vector<1x512xi32>
    %7 = arith.andi %1, %6 : vector<1x512xi32>
    %c1_i32 = arith.constant 1 : i32
    %8 = vector.broadcast %c1_i32 : i32 to vector<1x512xi32>
    %9 = arith.cmpi sge, %5, %8 : vector<1x512xi32>
    %c14_i32 = arith.constant 14 : i32
    %10 = vector.broadcast %c14_i32 : i32 to vector<1x512xi32>
    %11 = arith.cmpi sle, %5, %10 : vector<1x512xi32>
    %c1_i32_1 = arith.constant 1 : i32
    %12 = vector.broadcast %c1_i32_1 : i32 to vector<1x512xi32>
    %13 = arith.cmpi sge, %7, %12 : vector<1x512xi32>
    %c14_i32_2 = arith.constant 14 : i32
    %14 = vector.broadcast %c14_i32_2 : i32 to vector<1x512xi32>
    %15 = arith.cmpi sle, %7, %14 : vector<1x512xi32>
    %16 = arith.andi %9, %13 : vector<1x512xi1>
    %17 = arith.andi %9, %15 : vector<1x512xi1>
    %18 = arith.andi %11, %13 : vector<1x512xi1>
    %19 = arith.andi %11, %15 : vector<1x512xi1>
    %20 = tpu.iota {dimensions = array<i32: 1>} : vector<1x128xi32>
    %c63_i32 = arith.constant 63 : i32
    %21 = vector.broadcast %c63_i32 : i32 to vector<1x128xi32>
    %22 = arith.andi %20, %21 : vector<1x128xi32>
    %c3_i32 = arith.constant 3 : i32
    %23 = vector.broadcast %c3_i32 : i32 to vector<1x128xi32>
    %24 = arith.shrsi %22, %23 : vector<1x128xi32>
    %c7_i32 = arith.constant 7 : i32
    %25 = vector.broadcast %c7_i32 : i32 to vector<1x128xi32>
    %26 = arith.andi %20, %25 : vector<1x128xi32>
    %c1_i32_3 = arith.constant 1 : i32
    %27 = vector.broadcast %c1_i32_3 : i32 to vector<1x128xi32>
    %28 = arith.cmpi sge, %24, %27 : vector<1x128xi32>
    %c6_i32 = arith.constant 6 : i32
    %29 = vector.broadcast %c6_i32 : i32 to vector<1x128xi32>
    %30 = arith.cmpi sle, %24, %29 : vector<1x128xi32>
    %c1_i32_4 = arith.constant 1 : i32
    %31 = vector.broadcast %c1_i32_4 : i32 to vector<1x128xi32>
    %32 = arith.cmpi sge, %26, %31 : vector<1x128xi32>
    %c6_i32_5 = arith.constant 6 : i32
    %33 = vector.broadcast %c6_i32_5 : i32 to vector<1x128xi32>
    %34 = arith.cmpi sle, %26, %33 : vector<1x128xi32>
    %35 = arith.andi %28, %32 : vector<1x128xi1>
    %36 = arith.andi %28, %34 : vector<1x128xi1>
    %37 = arith.andi %30, %32 : vector<1x128xi1>
    %38 = arith.andi %30, %34 : vector<1x128xi1>
    %c17_i32 = arith.constant 17 : i32
    %39 = tpu.dynamic_rotate %0 by %c17_i32 dim 1 : vector<4x512xf32>, i32 -> vector<4x512xf32>
    %cst = arith.constant 0.000000e+00 : f32
    %40 = vector.shape_cast %16 : vector<1x512xi1> to vector<1x512xi1>
    %41 = vector.broadcast %40 : vector<1x512xi1> to vector<4x512xi1>
    %42 = vector.broadcast %cst : f32 to vector<4x512xf32>
    %43 = arith.select %41, %39, %42 : vector<4x512xi1>, vector<4x512xf32>
    %c0_6 = arith.constant 0 : index
    %c0_7 = arith.constant 0 : index
    %c0_8 = arith.constant 0 : index
    %44 = vector.load %arg3[%c0_6, %c0_7, %c0_8] : memref<9x8x4xbf16, #tpu.memory_space<vmem>>, vector<1x8x4xbf16>
    %45 = vector.shape_cast %44 : vector<1x8x4xbf16> to vector<8x4xbf16>
    %46 = arith.truncf %43 : vector<4x512xf32> to vector<4x512xbf16>
    %cst_9 = arith.constant dense<0.000000e+00> : vector<8x512xf32>
    %47 = tpu.matmul %45, %46, %cst_9 {dimension_numbers = #tpu.dot_dimension_numbers<[1], [0], [0], [1], [0, 0, 1, 1], [], []>} : vector<8x4xbf16>, vector<4x512xbf16>, vector<8x512xf32> -> vector<8x512xf32>
    %c16_i32 = arith.constant 16 : i32
    %48 = tpu.dynamic_rotate %0 by %c16_i32 dim 1 : vector<4x512xf32>, i32 -> vector<4x512xf32>
    %cst_10 = arith.constant 0.000000e+00 : f32
    %49 = vector.shape_cast %9 : vector<1x512xi1> to vector<1x512xi1>
    %50 = vector.broadcast %49 : vector<1x512xi1> to vector<4x512xi1>
    %51 = vector.broadcast %cst_10 : f32 to vector<4x512xf32>
    %52 = arith.select %50, %48, %51 : vector<4x512xi1>, vector<4x512xf32>
    %c1 = arith.constant 1 : index
    %c0_11 = arith.constant 0 : index
    %c0_12 = arith.constant 0 : index
    %53 = vector.load %arg3[%c1, %c0_11, %c0_12] : memref<9x8x4xbf16, #tpu.memory_space<vmem>>, vector<1x8x4xbf16>
    %54 = vector.shape_cast %53 : vector<1x8x4xbf16> to vector<8x4xbf16>
    %55 = arith.truncf %52 : vector<4x512xf32> to vector<4x512xbf16>
    %cst_13 = arith.constant dense<0.000000e+00> : vector<8x512xf32>
    %56 = tpu.matmul %54, %55, %cst_13 {dimension_numbers = #tpu.dot_dimension_numbers<[1], [0], [0], [1], [0, 0, 1, 1], [], []>} : vector<8x4xbf16>, vector<4x512xbf16>, vector<8x512xf32> -> vector<8x512xf32>
    %57 = arith.addf %47, %56 : vector<8x512xf32>
    %c15_i32_14 = arith.constant 15 : i32
    %58 = tpu.dynamic_rotate %0 by %c15_i32_14 dim 1 : vector<4x512xf32>, i32 -> vector<4x512xf32>
    %cst_15 = arith.constant 0.000000e+00 : f32
    %59 = vector.shape_cast %17 : vector<1x512xi1> to vector<1x512xi1>
    %60 = vector.broadcast %59 : vector<1x512xi1> to vector<4x512xi1>
    %61 = vector.broadcast %cst_15 : f32 to vector<4x512xf32>
    %62 = arith.select %60, %58, %61 : vector<4x512xi1>, vector<4x512xf32>
    %c2 = arith.constant 2 : index
    %c0_16 = arith.constant 0 : index
    %c0_17 = arith.constant 0 : index
    %63 = vector.load %arg3[%c2, %c0_16, %c0_17] : memref<9x8x4xbf16, #tpu.memory_space<vmem>>, vector<1x8x4xbf16>
    %64 = vector.shape_cast %63 : vector<1x8x4xbf16> to vector<8x4xbf16>
    %65 = arith.truncf %62 : vector<4x512xf32> to vector<4x512xbf16>
    %cst_18 = arith.constant dense<0.000000e+00> : vector<8x512xf32>
    %66 = tpu.matmul %64, %65, %cst_18 {dimension_numbers = #tpu.dot_dimension_numbers<[1], [0], [0], [1], [0, 0, 1, 1], [], []>} : vector<8x4xbf16>, vector<4x512xbf16>, vector<8x512xf32> -> vector<8x512xf32>
    %67 = arith.addf %57, %66 : vector<8x512xf32>
    %c1_i32_19 = arith.constant 1 : i32
    %68 = tpu.dynamic_rotate %0 by %c1_i32_19 dim 1 : vector<4x512xf32>, i32 -> vector<4x512xf32>
    %cst_20 = arith.constant 0.000000e+00 : f32
    %69 = vector.shape_cast %13 : vector<1x512xi1> to vector<1x512xi1>
    %70 = vector.broadcast %69 : vector<1x512xi1> to vector<4x512xi1>
    %71 = vector.broadcast %cst_20 : f32 to vector<4x512xf32>
    %72 = arith.select %70, %68, %71 : vector<4x512xi1>, vector<4x512xf32>
    %c3 = arith.constant 3 : index
    %c0_21 = arith.constant 0 : index
    %c0_22 = arith.constant 0 : index
    %73 = vector.load %arg3[%c3, %c0_21, %c0_22] : memref<9x8x4xbf16, #tpu.memory_space<vmem>>, vector<1x8x4xbf16>
    %74 = vector.shape_cast %73 : vector<1x8x4xbf16> to vector<8x4xbf16>
    %75 = arith.truncf %72 : vector<4x512xf32> to vector<4x512xbf16>
    %cst_23 = arith.constant dense<0.000000e+00> : vector<8x512xf32>
    %76 = tpu.matmul %74, %75, %cst_23 {dimension_numbers = #tpu.dot_dimension_numbers<[1], [0], [0], [1], [0, 0, 1, 1], [], []>} : vector<8x4xbf16>, vector<4x512xbf16>, vector<8x512xf32> -> vector<8x512xf32>
    %77 = arith.addf %67, %76 : vector<8x512xf32>
    %c4 = arith.constant 4 : index
    %c0_24 = arith.constant 0 : index
    %c0_25 = arith.constant 0 : index
    %78 = vector.load %arg3[%c4, %c0_24, %c0_25] : memref<9x8x4xbf16, #tpu.memory_space<vmem>>, vector<1x8x4xbf16>
    %79 = vector.shape_cast %78 : vector<1x8x4xbf16> to vector<8x4xbf16>
    %80 = arith.truncf %0 : vector<4x512xf32> to vector<4x512xbf16>
    %cst_26 = arith.constant dense<0.000000e+00> : vector<8x512xf32>
    %81 = tpu.matmul %79, %80, %cst_26 {dimension_numbers = #tpu.dot_dimension_numbers<[1], [0], [0], [1], [0, 0, 1, 1], [], []>} : vector<8x4xbf16>, vector<4x512xbf16>, vector<8x512xf32> -> vector<8x512xf32>
    %82 = arith.addf %77, %81 : vector<8x512xf32>
    %c511_i32 = arith.constant 511 : i32
    %83 = tpu.dynamic_rotate %0 by %c511_i32 dim 1 : vector<4x512xf32>, i32 -> vector<4x512xf32>
    %cst_27 = arith.constant 0.000000e+00 : f32
    %84 = vector.shape_cast %15 : vector<1x512xi1> to vector<1x512xi1>
    %85 = vector.broadcast %84 : vector<1x512xi1> to vector<4x512xi1>
    %86 = vector.broadcast %cst_27 : f32 to vector<4x512xf32>
    %87 = arith.select %85, %83, %86 : vector<4x512xi1>, vector<4x512xf32>
    %c5 = arith.constant 5 : index
    %c0_28 = arith.constant 0 : index
    %c0_29 = arith.constant 0 : index
    %88 = vector.load %arg3[%c5, %c0_28, %c0_29] : memref<9x8x4xbf16, #tpu.memory_space<vmem>>, vector<1x8x4xbf16>
    %89 = vector.shape_cast %88 : vector<1x8x4xbf16> to vector<8x4xbf16>
    %90 = arith.truncf %87 : vector<4x512xf32> to vector<4x512xbf16>
    %cst_30 = arith.constant dense<0.000000e+00> : vector<8x512xf32>
    %91 = tpu.matmul %89, %90, %cst_30 {dimension_numbers = #tpu.dot_dimension_numbers<[1], [0], [0], [1], [0, 0, 1, 1], [], []>} : vector<8x4xbf16>, vector<4x512xbf16>, vector<8x512xf32> -> vector<8x512xf32>
    %92 = arith.addf %82, %91 : vector<8x512xf32>
    %c497_i32 = arith.constant 497 : i32
    %93 = tpu.dynamic_rotate %0 by %c497_i32 dim 1 : vector<4x512xf32>, i32 -> vector<4x512xf32>
    %cst_31 = arith.constant 0.000000e+00 : f32
    %94 = vector.shape_cast %18 : vector<1x512xi1> to vector<1x512xi1>
    %95 = vector.broadcast %94 : vector<1x512xi1> to vector<4x512xi1>
    %96 = vector.broadcast %cst_31 : f32 to vector<4x512xf32>
    %97 = arith.select %95, %93, %96 : vector<4x512xi1>, vector<4x512xf32>
    %c6 = arith.constant 6 : index
    %c0_32 = arith.constant 0 : index
    %c0_33 = arith.constant 0 : index
    %98 = vector.load %arg3[%c6, %c0_32, %c0_33] : memref<9x8x4xbf16, #tpu.memory_space<vmem>>, vector<1x8x4xbf16>
    %99 = vector.shape_cast %98 : vector<1x8x4xbf16> to vector<8x4xbf16>
    %100 = arith.truncf %97 : vector<4x512xf32> to vector<4x512xbf16>
    %cst_34 = arith.constant dense<0.000000e+00> : vector<8x512xf32>
    %101 = tpu.matmul %99, %100, %cst_34 {dimension_numbers = #tpu.dot_dimension_numbers<[1], [0], [0], [1], [0, 0, 1, 1], [], []>} : vector<8x4xbf16>, vector<4x512xbf16>, vector<8x512xf32> -> vector<8x512xf32>
    %102 = arith.addf %92, %101 : vector<8x512xf32>
    %c496_i32 = arith.constant 496 : i32
    %103 = tpu.dynamic_rotate %0 by %c496_i32 dim 1 : vector<4x512xf32>, i32 -> vector<4x512xf32>
    %cst_35 = arith.constant 0.000000e+00 : f32
    %104 = vector.shape_cast %11 : vector<1x512xi1> to vector<1x512xi1>
    %105 = vector.broadcast %104 : vector<1x512xi1> to vector<4x512xi1>
    %106 = vector.broadcast %cst_35 : f32 to vector<4x512xf32>
    %107 = arith.select %105, %103, %106 : vector<4x512xi1>, vector<4x512xf32>
    %c7 = arith.constant 7 : index
    %c0_36 = arith.constant 0 : index
    %c0_37 = arith.constant 0 : index
    %108 = vector.load %arg3[%c7, %c0_36, %c0_37] : memref<9x8x4xbf16, #tpu.memory_space<vmem>>, vector<1x8x4xbf16>
    %109 = vector.shape_cast %108 : vector<1x8x4xbf16> to vector<8x4xbf16>
    %110 = arith.truncf %107 : vector<4x512xf32> to vector<4x512xbf16>
    %cst_38 = arith.constant dense<0.000000e+00> : vector<8x512xf32>
    %111 = tpu.matmul %109, %110, %cst_38 {dimension_numbers = #tpu.dot_dimension_numbers<[1], [0], [0], [1], [0, 0, 1, 1], [], []>} : vector<8x4xbf16>, vector<4x512xbf16>, vector<8x512xf32> -> vector<8x512xf32>
    %112 = arith.addf %102, %111 : vector<8x512xf32>
    %c495_i32 = arith.constant 495 : i32
    %113 = tpu.dynamic_rotate %0 by %c495_i32 dim 1 : vector<4x512xf32>, i32 -> vector<4x512xf32>
    %cst_39 = arith.constant 0.000000e+00 : f32
    %114 = vector.shape_cast %19 : vector<1x512xi1> to vector<1x512xi1>
    %115 = vector.broadcast %114 : vector<1x512xi1> to vector<4x512xi1>
    %116 = vector.broadcast %cst_39 : f32 to vector<4x512xf32>
    %117 = arith.select %115, %113, %116 : vector<4x512xi1>, vector<4x512xf32>
    %c8 = arith.constant 8 : index
    %c0_40 = arith.constant 0 : index
    %c0_41 = arith.constant 0 : index
    %118 = vector.load %arg3[%c8, %c0_40, %c0_41] : memref<9x8x4xbf16, #tpu.memory_space<vmem>>, vector<1x8x4xbf16>
    %119 = vector.shape_cast %118 : vector<1x8x4xbf16> to vector<8x4xbf16>
    %120 = arith.truncf %117 : vector<4x512xf32> to vector<4x512xbf16>
    %cst_42 = arith.constant dense<0.000000e+00> : vector<8x512xf32>
    %121 = tpu.matmul %119, %120, %cst_42 {dimension_numbers = #tpu.dot_dimension_numbers<[1], [0], [0], [1], [0, 0, 1, 1], [], []>} : vector<8x4xbf16>, vector<4x512xbf16>, vector<8x512xf32> -> vector<8x512xf32>
    %122 = arith.addf %112, %121 : vector<8x512xf32>
    %c0_43 = arith.constant 0 : index
    %c0_44 = arith.constant 0 : index
    %123 = vector.load %arg4[%c0_43, %c0_44] : memref<8x1xf32, #tpu.memory_space<vmem>>, vector<8x1xf32>
    %124 = vector.broadcast %123 : vector<8x1xf32> to vector<8x512xf32>
    %125 = arith.addf %122, %124 : vector<8x512xf32>
    %cst_45 = arith.constant 0.000000e+00 : f32
    %126 = vector.broadcast %cst_45 : f32 to vector<8x512xf32>
    %127 = arith.maximumf %125, %126 : vector<8x512xf32>
    %128 = tpu.iota {dimensions = array<i32: 1>} : vector<1x512xi32>
    %c8_i32 = arith.constant 8 : i32
    %129 = vector.broadcast %c8_i32 : i32 to vector<1x512xi32>
    %130 = arith.shrsi %128, %129 : vector<1x512xi32>
    %c0_i32 = arith.constant 0 : i32
    %131 = vector.broadcast %c0_i32 : i32 to vector<1x512xi32>
    %c2_i32 = arith.constant 2 : i32
    %132 = arith.muli %arg0, %c2_i32 : i32
    %c0_i32_46 = arith.constant 0 : i32
    %133 = arith.addi %132, %c0_i32_46 : i32
    %134 = arith.index_cast %133 : i32 to index
    %135 = memref.load %arg1[%134] : memref<2xi32, #tpu.memory_space<smem>>
    %c0_i32_47 = arith.constant 0 : i32
    %136 = vector.broadcast %c0_i32_47 : i32 to vector<1x512xi32>
    %137 = arith.cmpi eq, %130, %136 : vector<1x512xi32>
    %138 = vector.broadcast %135 : i32 to vector<1x512xi32>
    %139 = arith.select %137, %138, %131 : vector<1x512xi1>, vector<1x512xi32>
    %c2_i32_48 = arith.constant 2 : i32
    %140 = arith.muli %arg0, %c2_i32_48 : i32
    %c1_i32_49 = arith.constant 1 : i32
    %141 = arith.addi %140, %c1_i32_49 : i32
    %142 = arith.index_cast %141 : i32 to index
    %143 = memref.load %arg1[%142] : memref<2xi32, #tpu.memory_space<smem>>
    %c1_i32_50 = arith.constant 1 : i32
    %144 = vector.broadcast %c1_i32_50 : i32 to vector<1x512xi32>
    %145 = arith.cmpi eq, %130, %144 : vector<1x512xi32>
    %146 = vector.broadcast %143 : i32 to vector<1x512xi32>
    %147 = arith.select %145, %146, %139 : vector<1x512xi1>, vector<1x512xi32>
    %148 = tpu.iota {dimensions = array<i32: 0>} : vector<3x1xi32>
    %149 = vector.broadcast %148 : vector<3x1xi32> to vector<3x512xi32>
    %150 = vector.broadcast %147 : vector<1x512xi32> to vector<3x512xi32>
    %151 = arith.cmpi eq, %149, %150 : vector<3x512xi32>
    %152 = arith.extui %151 : vector<3x512xi1> to vector<3x512xi32>
    %153 = arith.sitofp %152 : vector<3x512xi32> to vector<3x512xf32>
    %c0_51 = arith.constant 0 : index
    %c0_52 = arith.constant 0 : index
    %154 = vector.load %arg5[%c0_51, %c0_52] : memref<8x3xf32, #tpu.memory_space<vmem>>, vector<8x3xf32>
    %cst_53 = arith.constant dense<0.000000e+00> : vector<8x512xf32>
    %155 = tpu.matmul %154, %153, %cst_53 {dimension_numbers = #tpu.dot_dimension_numbers<[1], [0], [0], [1], [0, 0, 1, 1], [], []>} : vector<8x3xf32>, vector<3x512xf32>, vector<8x512xf32> -> vector<8x512xf32>
    %156 = arith.addf %127, %155 : vector<8x512xf32>
    %c17_i32_54 = arith.constant 17 : i32
    %157 = tpu.dynamic_rotate %156 by %c17_i32_54 dim 1 : vector<8x512xf32>, i32 -> vector<8x512xf32>
    %cst_55 = arith.constant 0.000000e+00 : f32
    %158 = vector.shape_cast %16 : vector<1x512xi1> to vector<1x512xi1>
    %159 = vector.broadcast %158 : vector<1x512xi1> to vector<8x512xi1>
    %160 = vector.broadcast %cst_55 : f32 to vector<8x512xf32>
    %161 = arith.select %159, %157, %160 : vector<8x512xi1>, vector<8x512xf32>
    %c0_56 = arith.constant 0 : index
    %c0_57 = arith.constant 0 : index
    %c0_58 = arith.constant 0 : index
    %162 = vector.load %arg6[%c0_56, %c0_57, %c0_58] : memref<9x8x8xbf16, #tpu.memory_space<vmem>>, vector<1x8x8xbf16>
    %163 = vector.shape_cast %162 : vector<1x8x8xbf16> to vector<8x8xbf16>
    %164 = arith.truncf %161 : vector<8x512xf32> to vector<8x512xbf16>
    %cst_59 = arith.constant dense<0.000000e+00> : vector<8x512xf32>
    %165 = tpu.matmul %163, %164, %cst_59 {dimension_numbers = #tpu.dot_dimension_numbers<[1], [0], [0], [1], [0, 0, 1, 1], [], []>} : vector<8x8xbf16>, vector<8x512xbf16>, vector<8x512xf32> -> vector<8x512xf32>
    %c16_i32_60 = arith.constant 16 : i32
    %166 = tpu.dynamic_rotate %156 by %c16_i32_60 dim 1 : vector<8x512xf32>, i32 -> vector<8x512xf32>
    %cst_61 = arith.constant 0.000000e+00 : f32
    %167 = vector.shape_cast %9 : vector<1x512xi1> to vector<1x512xi1>
    %168 = vector.broadcast %167 : vector<1x512xi1> to vector<8x512xi1>
    %169 = vector.broadcast %cst_61 : f32 to vector<8x512xf32>
    %170 = arith.select %168, %166, %169 : vector<8x512xi1>, vector<8x512xf32>
    %c1_62 = arith.constant 1 : index
    %c0_63 = arith.constant 0 : index
    %c0_64 = arith.constant 0 : index
    %171 = vector.load %arg6[%c1_62, %c0_63, %c0_64] : memref<9x8x8xbf16, #tpu.memory_space<vmem>>, vector<1x8x8xbf16>
    %172 = vector.shape_cast %171 : vector<1x8x8xbf16> to vector<8x8xbf16>
    %173 = arith.truncf %170 : vector<8x512xf32> to vector<8x512xbf16>
    %cst_65 = arith.constant dense<0.000000e+00> : vector<8x512xf32>
    %174 = tpu.matmul %172, %173, %cst_65 {dimension_numbers = #tpu.dot_dimension_numbers<[1], [0], [0], [1], [0, 0, 1, 1], [], []>} : vector<8x8xbf16>, vector<8x512xbf16>, vector<8x512xf32> -> vector<8x512xf32>
    %175 = arith.addf %165, %174 : vector<8x512xf32>
    %c15_i32_66 = arith.constant 15 : i32
    %176 = tpu.dynamic_rotate %156 by %c15_i32_66 dim 1 : vector<8x512xf32>, i32 -> vector<8x512xf32>
    %cst_67 = arith.constant 0.000000e+00 : f32
    %177 = vector.shape_cast %17 : vector<1x512xi1> to vector<1x512xi1>
    %178 = vector.broadcast %177 : vector<1x512xi1> to vector<8x512xi1>
    %179 = vector.broadcast %cst_67 : f32 to vector<8x512xf32>
    %180 = arith.select %178, %176, %179 : vector<8x512xi1>, vector<8x512xf32>
    %c2_68 = arith.constant 2 : index
    %c0_69 = arith.constant 0 : index
    %c0_70 = arith.constant 0 : index
    %181 = vector.load %arg6[%c2_68, %c0_69, %c0_70] : memref<9x8x8xbf16, #tpu.memory_space<vmem>>, vector<1x8x8xbf16>
    %182 = vector.shape_cast %181 : vector<1x8x8xbf16> to vector<8x8xbf16>
    %183 = arith.truncf %180 : vector<8x512xf32> to vector<8x512xbf16>
    %cst_71 = arith.constant dense<0.000000e+00> : vector<8x512xf32>
    %184 = tpu.matmul %182, %183, %cst_71 {dimension_numbers = #tpu.dot_dimension_numbers<[1], [0], [0], [1], [0, 0, 1, 1], [], []>} : vector<8x8xbf16>, vector<8x512xbf16>, vector<8x512xf32> -> vector<8x512xf32>
    %185 = arith.addf %175, %184 : vector<8x512xf32>
    %c1_i32_72 = arith.constant 1 : i32
    %186 = tpu.dynamic_rotate %156 by %c1_i32_72 dim 1 : vector<8x512xf32>, i32 -> vector<8x512xf32>
    %cst_73 = arith.constant 0.000000e+00 : f32
    %187 = vector.shape_cast %13 : vector<1x512xi1> to vector<1x512xi1>
    %188 = vector.broadcast %187 : vector<1x512xi1> to vector<8x512xi1>
    %189 = vector.broadcast %cst_73 : f32 to vector<8x512xf32>
    %190 = arith.select %188, %186, %189 : vector<8x512xi1>, vector<8x512xf32>
    %c3_74 = arith.constant 3 : index
    %c0_75 = arith.constant 0 : index
    %c0_76 = arith.constant 0 : index
    %191 = vector.load %arg6[%c3_74, %c0_75, %c0_76] : memref<9x8x8xbf16, #tpu.memory_space<vmem>>, vector<1x8x8xbf16>
    %192 = vector.shape_cast %191 : vector<1x8x8xbf16> to vector<8x8xbf16>
    %193 = arith.truncf %190 : vector<8x512xf32> to vector<8x512xbf16>
    %cst_77 = arith.constant dense<0.000000e+00> : vector<8x512xf32>
    %194 = tpu.matmul %192, %193, %cst_77 {dimension_numbers = #tpu.dot_dimension_numbers<[1], [0], [0], [1], [0, 0, 1, 1], [], []>} : vector<8x8xbf16>, vector<8x512xbf16>, vector<8x512xf32> -> vector<8x512xf32>
    %195 = arith.addf %185, %194 : vector<8x512xf32>
    %c4_78 = arith.constant 4 : index
    %c0_79 = arith.constant 0 : index
    %c0_80 = arith.constant 0 : index
    %196 = vector.load %arg6[%c4_78, %c0_79, %c0_80] : memref<9x8x8xbf16, #tpu.memory_space<vmem>>, vector<1x8x8xbf16>
    %197 = vector.shape_cast %196 : vector<1x8x8xbf16> to vector<8x8xbf16>
    %198 = arith.truncf %156 : vector<8x512xf32> to vector<8x512xbf16>
    %cst_81 = arith.constant dense<0.000000e+00> : vector<8x512xf32>
    %199 = tpu.matmul %197, %198, %cst_81 {dimension_numbers = #tpu.dot_dimension_numbers<[1], [0], [0], [1], [0, 0, 1, 1], [], []>} : vector<8x8xbf16>, vector<8x512xbf16>, vector<8x512xf32> -> vector<8x512xf32>
    %200 = arith.addf %195, %199 : vector<8x512xf32>
    %c511_i32_82 = arith.constant 511 : i32
    %201 = tpu.dynamic_rotate %156 by %c511_i32_82 dim 1 : vector<8x512xf32>, i32 -> vector<8x512xf32>
    %cst_83 = arith.constant 0.000000e+00 : f32
    %202 = vector.shape_cast %15 : vector<1x512xi1> to vector<1x512xi1>
    %203 = vector.broadcast %202 : vector<1x512xi1> to vector<8x512xi1>
    %204 = vector.broadcast %cst_83 : f32 to vector<8x512xf32>
    %205 = arith.select %203, %201, %204 : vector<8x512xi1>, vector<8x512xf32>
    %c5_84 = arith.constant 5 : index
    %c0_85 = arith.constant 0 : index
    %c0_86 = arith.constant 0 : index
    %206 = vector.load %arg6[%c5_84, %c0_85, %c0_86] : memref<9x8x8xbf16, #tpu.memory_space<vmem>>, vector<1x8x8xbf16>
    %207 = vector.shape_cast %206 : vector<1x8x8xbf16> to vector<8x8xbf16>
    %208 = arith.truncf %205 : vector<8x512xf32> to vector<8x512xbf16>
    %cst_87 = arith.constant dense<0.000000e+00> : vector<8x512xf32>
    %209 = tpu.matmul %207, %208, %cst_87 {dimension_numbers = #tpu.dot_dimension_numbers<[1], [0], [0], [1], [0, 0, 1, 1], [], []>} : vector<8x8xbf16>, vector<8x512xbf16>, vector<8x512xf32> -> vector<8x512xf32>
    %210 = arith.addf %200, %209 : vector<8x512xf32>
    %c497_i32_88 = arith.constant 497 : i32
    %211 = tpu.dynamic_rotate %156 by %c497_i32_88 dim 1 : vector<8x512xf32>, i32 -> vector<8x512xf32>
    %cst_89 = arith.constant 0.000000e+00 : f32
    %212 = vector.shape_cast %18 : vector<1x512xi1> to vector<1x512xi1>
    %213 = vector.broadcast %212 : vector<1x512xi1> to vector<8x512xi1>
    %214 = vector.broadcast %cst_89 : f32 to vector<8x512xf32>
    %215 = arith.select %213, %211, %214 : vector<8x512xi1>, vector<8x512xf32>
    %c6_90 = arith.constant 6 : index
    %c0_91 = arith.constant 0 : index
    %c0_92 = arith.constant 0 : index
    %216 = vector.load %arg6[%c6_90, %c0_91, %c0_92] : memref<9x8x8xbf16, #tpu.memory_space<vmem>>, vector<1x8x8xbf16>
    %217 = vector.shape_cast %216 : vector<1x8x8xbf16> to vector<8x8xbf16>
    %218 = arith.truncf %215 : vector<8x512xf32> to vector<8x512xbf16>
    %cst_93 = arith.constant dense<0.000000e+00> : vector<8x512xf32>
    %219 = tpu.matmul %217, %218, %cst_93 {dimension_numbers = #tpu.dot_dimension_numbers<[1], [0], [0], [1], [0, 0, 1, 1], [], []>} : vector<8x8xbf16>, vector<8x512xbf16>, vector<8x512xf32> -> vector<8x512xf32>
    %220 = arith.addf %210, %219 : vector<8x512xf32>
    %c496_i32_94 = arith.constant 496 : i32
    %221 = tpu.dynamic_rotate %156 by %c496_i32_94 dim 1 : vector<8x512xf32>, i32 -> vector<8x512xf32>
    %cst_95 = arith.constant 0.000000e+00 : f32
    %222 = vector.shape_cast %11 : vector<1x512xi1> to vector<1x512xi1>
    %223 = vector.broadcast %222 : vector<1x512xi1> to vector<8x512xi1>
    %224 = vector.broadcast %cst_95 : f32 to vector<8x512xf32>
    %225 = arith.select %223, %221, %224 : vector<8x512xi1>, vector<8x512xf32>
    %c7_96 = arith.constant 7 : index
    %c0_97 = arith.constant 0 : index
    %c0_98 = arith.constant 0 : index
    %226 = vector.load %arg6[%c7_96, %c0_97, %c0_98] : memref<9x8x8xbf16, #tpu.memory_space<vmem>>, vector<1x8x8xbf16>
    %227 = vector.shape_cast %226 : vector<1x8x8xbf16> to vector<8x8xbf16>
    %228 = arith.truncf %225 : vector<8x512xf32> to vector<8x512xbf16>
    %cst_99 = arith.constant dense<0.000000e+00> : vector<8x512xf32>
    %229 = tpu.matmul %227, %228, %cst_99 {dimension_numbers = #tpu.dot_dimension_numbers<[1], [0], [0], [1], [0, 0, 1, 1], [], []>} : vector<8x8xbf16>, vector<8x512xbf16>, vector<8x512xf32> -> vector<8x512xf32>
    %230 = arith.addf %220, %229 : vector<8x512xf32>
    %c495_i32_100 = arith.constant 495 : i32
    %231 = tpu.dynamic_rotate %156 by %c495_i32_100 dim 1 : vector<8x512xf32>, i32 -> vector<8x512xf32>
    %cst_101 = arith.constant 0.000000e+00 : f32
    %232 = vector.shape_cast %19 : vector<1x512xi1> to vector<1x512xi1>
    %233 = vector.broadcast %232 : vector<1x512xi1> to vector<8x512xi1>
    %234 = vector.broadcast %cst_101 : f32 to vector<8x512xf32>
    %235 = arith.select %233, %231, %234 : vector<8x512xi1>, vector<8x512xf32>
    %c8_102 = arith.constant 8 : index
    %c0_103 = arith.constant 0 : index
    %c0_104 = arith.constant 0 : index
    %236 = vector.load %arg6[%c8_102, %c0_103, %c0_104] : memref<9x8x8xbf16, #tpu.memory_space<vmem>>, vector<1x8x8xbf16>
    %237 = vector.shape_cast %236 : vector<1x8x8xbf16> to vector<8x8xbf16>
    %238 = arith.truncf %235 : vector<8x512xf32> to vector<8x512xbf16>
    %cst_105 = arith.constant dense<0.000000e+00> : vector<8x512xf32>
    %239 = tpu.matmul %237, %238, %cst_105 {dimension_numbers = #tpu.dot_dimension_numbers<[1], [0], [0], [1], [0, 0, 1, 1], [], []>} : vector<8x8xbf16>, vector<8x512xbf16>, vector<8x512xf32> -> vector<8x512xf32>
    %240 = arith.addf %230, %239 : vector<8x512xf32>
    %c0_106 = arith.constant 0 : index
    %c0_107 = arith.constant 0 : index
    %241 = vector.load %arg10[%c0_106, %c0_107] : memref<512x128xf32, #tpu.memory_space<vmem>>, vector<512x128xf32>
    %cst_108 = arith.constant dense<0.000000e+00> : vector<8x128xf32>
    %242 = tpu.matmul %240, %241, %cst_108 {dimension_numbers = #tpu.dot_dimension_numbers<[1], [0], [0], [1], [0, 0, 1, 1], [], []>} : vector<8x512xf32>, vector<512x128xf32>, vector<8x128xf32> -> vector<8x128xf32>
    %c0_109 = arith.constant 0 : index
    %c0_110 = arith.constant 0 : index
    %243 = vector.load %arg7[%c0_109, %c0_110] : memref<8x1xf32, #tpu.memory_space<vmem>>, vector<8x1xf32>
    %244 = vector.broadcast %243 : vector<8x1xf32> to vector<8x128xf32>
    %245 = arith.addf %242, %244 : vector<8x128xf32>
    %cst_111 = arith.constant 0.000000e+00 : f32
    %246 = vector.broadcast %cst_111 : f32 to vector<8x128xf32>
    %247 = arith.maximumf %245, %246 : vector<8x128xf32>
    %c9_i32 = arith.constant 9 : i32
    %248 = tpu.dynamic_rotate %247 by %c9_i32 dim 1 : vector<8x128xf32>, i32 -> vector<8x128xf32>
    %cst_112 = arith.constant 0.000000e+00 : f32
    %249 = vector.shape_cast %35 : vector<1x128xi1> to vector<1x128xi1>
    %250 = vector.broadcast %249 : vector<1x128xi1> to vector<8x128xi1>
    %251 = vector.broadcast %cst_112 : f32 to vector<8x128xf32>
    %252 = arith.select %250, %248, %251 : vector<8x128xi1>, vector<8x128xf32>
    %c0_113 = arith.constant 0 : index
    %c0_114 = arith.constant 0 : index
    %c0_115 = arith.constant 0 : index
    %253 = vector.load %arg8[%c0_113, %c0_114, %c0_115] : memref<9x8x8xbf16, #tpu.memory_space<vmem>>, vector<1x8x8xbf16>
    %254 = vector.shape_cast %253 : vector<1x8x8xbf16> to vector<8x8xbf16>
    %255 = arith.truncf %252 : vector<8x128xf32> to vector<8x128xbf16>
    %cst_116 = arith.constant dense<0.000000e+00> : vector<8x128xf32>
    %256 = tpu.matmul %254, %255, %cst_116 {dimension_numbers = #tpu.dot_dimension_numbers<[1], [0], [0], [1], [0, 0, 1, 1], [], []>} : vector<8x8xbf16>, vector<8x128xbf16>, vector<8x128xf32> -> vector<8x128xf32>
    %c8_i32_117 = arith.constant 8 : i32
    %257 = tpu.dynamic_rotate %247 by %c8_i32_117 dim 1 : vector<8x128xf32>, i32 -> vector<8x128xf32>
    %cst_118 = arith.constant 0.000000e+00 : f32
    %258 = vector.shape_cast %28 : vector<1x128xi1> to vector<1x128xi1>
    %259 = vector.broadcast %258 : vector<1x128xi1> to vector<8x128xi1>
    %260 = vector.broadcast %cst_118 : f32 to vector<8x128xf32>
    %261 = arith.select %259, %257, %260 : vector<8x128xi1>, vector<8x128xf32>
    %c1_119 = arith.constant 1 : index
    %c0_120 = arith.constant 0 : index
    %c0_121 = arith.constant 0 : index
    %262 = vector.load %arg8[%c1_119, %c0_120, %c0_121] : memref<9x8x8xbf16, #tpu.memory_space<vmem>>, vector<1x8x8xbf16>
    %263 = vector.shape_cast %262 : vector<1x8x8xbf16> to vector<8x8xbf16>
    %264 = arith.truncf %261 : vector<8x128xf32> to vector<8x128xbf16>
    %cst_122 = arith.constant dense<0.000000e+00> : vector<8x128xf32>
    %265 = tpu.matmul %263, %264, %cst_122 {dimension_numbers = #tpu.dot_dimension_numbers<[1], [0], [0], [1], [0, 0, 1, 1], [], []>} : vector<8x8xbf16>, vector<8x128xbf16>, vector<8x128xf32> -> vector<8x128xf32>
    %266 = arith.addf %256, %265 : vector<8x128xf32>
    %c7_i32_123 = arith.constant 7 : i32
    %267 = tpu.dynamic_rotate %247 by %c7_i32_123 dim 1 : vector<8x128xf32>, i32 -> vector<8x128xf32>
    %cst_124 = arith.constant 0.000000e+00 : f32
    %268 = vector.shape_cast %36 : vector<1x128xi1> to vector<1x128xi1>
    %269 = vector.broadcast %268 : vector<1x128xi1> to vector<8x128xi1>
    %270 = vector.broadcast %cst_124 : f32 to vector<8x128xf32>
    %271 = arith.select %269, %267, %270 : vector<8x128xi1>, vector<8x128xf32>
    %c2_125 = arith.constant 2 : index
    %c0_126 = arith.constant 0 : index
    %c0_127 = arith.constant 0 : index
    %272 = vector.load %arg8[%c2_125, %c0_126, %c0_127] : memref<9x8x8xbf16, #tpu.memory_space<vmem>>, vector<1x8x8xbf16>
    %273 = vector.shape_cast %272 : vector<1x8x8xbf16> to vector<8x8xbf16>
    %274 = arith.truncf %271 : vector<8x128xf32> to vector<8x128xbf16>
    %cst_128 = arith.constant dense<0.000000e+00> : vector<8x128xf32>
    %275 = tpu.matmul %273, %274, %cst_128 {dimension_numbers = #tpu.dot_dimension_numbers<[1], [0], [0], [1], [0, 0, 1, 1], [], []>} : vector<8x8xbf16>, vector<8x128xbf16>, vector<8x128xf32> -> vector<8x128xf32>
    %276 = arith.addf %266, %275 : vector<8x128xf32>
    %c1_i32_129 = arith.constant 1 : i32
    %277 = tpu.dynamic_rotate %247 by %c1_i32_129 dim 1 : vector<8x128xf32>, i32 -> vector<8x128xf32>
    %cst_130 = arith.constant 0.000000e+00 : f32
    %278 = vector.shape_cast %32 : vector<1x128xi1> to vector<1x128xi1>
    %279 = vector.broadcast %278 : vector<1x128xi1> to vector<8x128xi1>
    %280 = vector.broadcast %cst_130 : f32 to vector<8x128xf32>
    %281 = arith.select %279, %277, %280 : vector<8x128xi1>, vector<8x128xf32>
    %c3_131 = arith.constant 3 : index
    %c0_132 = arith.constant 0 : index
    %c0_133 = arith.constant 0 : index
    %282 = vector.load %arg8[%c3_131, %c0_132, %c0_133] : memref<9x8x8xbf16, #tpu.memory_space<vmem>>, vector<1x8x8xbf16>
    %283 = vector.shape_cast %282 : vector<1x8x8xbf16> to vector<8x8xbf16>
    %284 = arith.truncf %281 : vector<8x128xf32> to vector<8x128xbf16>
    %cst_134 = arith.constant dense<0.000000e+00> : vector<8x128xf32>
    %285 = tpu.matmul %283, %284, %cst_134 {dimension_numbers = #tpu.dot_dimension_numbers<[1], [0], [0], [1], [0, 0, 1, 1], [], []>} : vector<8x8xbf16>, vector<8x128xbf16>, vector<8x128xf32> -> vector<8x128xf32>
    %286 = arith.addf %276, %285 : vector<8x128xf32>
    %c4_135 = arith.constant 4 : index
    %c0_136 = arith.constant 0 : index
    %c0_137 = arith.constant 0 : index
    %287 = vector.load %arg8[%c4_135, %c0_136, %c0_137] : memref<9x8x8xbf16, #tpu.memory_space<vmem>>, vector<1x8x8xbf16>
    %288 = vector.shape_cast %287 : vector<1x8x8xbf16> to vector<8x8xbf16>
    %289 = arith.truncf %247 : vector<8x128xf32> to vector<8x128xbf16>
    %cst_138 = arith.constant dense<0.000000e+00> : vector<8x128xf32>
    %290 = tpu.matmul %288, %289, %cst_138 {dimension_numbers = #tpu.dot_dimension_numbers<[1], [0], [0], [1], [0, 0, 1, 1], [], []>} : vector<8x8xbf16>, vector<8x128xbf16>, vector<8x128xf32> -> vector<8x128xf32>
    %291 = arith.addf %286, %290 : vector<8x128xf32>
    %c127_i32 = arith.constant 127 : i32
    %292 = tpu.dynamic_rotate %247 by %c127_i32 dim 1 : vector<8x128xf32>, i32 -> vector<8x128xf32>
    %cst_139 = arith.constant 0.000000e+00 : f32
    %293 = vector.shape_cast %34 : vector<1x128xi1> to vector<1x128xi1>
    %294 = vector.broadcast %293 : vector<1x128xi1> to vector<8x128xi1>
    %295 = vector.broadcast %cst_139 : f32 to vector<8x128xf32>
    %296 = arith.select %294, %292, %295 : vector<8x128xi1>, vector<8x128xf32>
    %c5_140 = arith.constant 5 : index
    %c0_141 = arith.constant 0 : index
    %c0_142 = arith.constant 0 : index
    %297 = vector.load %arg8[%c5_140, %c0_141, %c0_142] : memref<9x8x8xbf16, #tpu.memory_space<vmem>>, vector<1x8x8xbf16>
    %298 = vector.shape_cast %297 : vector<1x8x8xbf16> to vector<8x8xbf16>
    %299 = arith.truncf %296 : vector<8x128xf32> to vector<8x128xbf16>
    %cst_143 = arith.constant dense<0.000000e+00> : vector<8x128xf32>
    %300 = tpu.matmul %298, %299, %cst_143 {dimension_numbers = #tpu.dot_dimension_numbers<[1], [0], [0], [1], [0, 0, 1, 1], [], []>} : vector<8x8xbf16>, vector<8x128xbf16>, vector<8x128xf32> -> vector<8x128xf32>
    %301 = arith.addf %291, %300 : vector<8x128xf32>
    %c121_i32 = arith.constant 121 : i32
    %302 = tpu.dynamic_rotate %247 by %c121_i32 dim 1 : vector<8x128xf32>, i32 -> vector<8x128xf32>
    %cst_144 = arith.constant 0.000000e+00 : f32
    %303 = vector.shape_cast %37 : vector<1x128xi1> to vector<1x128xi1>
    %304 = vector.broadcast %303 : vector<1x128xi1> to vector<8x128xi1>
    %305 = vector.broadcast %cst_144 : f32 to vector<8x128xf32>
    %306 = arith.select %304, %302, %305 : vector<8x128xi1>, vector<8x128xf32>
    %c6_145 = arith.constant 6 : index
    %c0_146 = arith.constant 0 : index
    %c0_147 = arith.constant 0 : index
    %307 = vector.load %arg8[%c6_145, %c0_146, %c0_147] : memref<9x8x8xbf16, #tpu.memory_space<vmem>>, vector<1x8x8xbf16>
    %308 = vector.shape_cast %307 : vector<1x8x8xbf16> to vector<8x8xbf16>
    %309 = arith.truncf %306 : vector<8x128xf32> to vector<8x128xbf16>
    %cst_148 = arith.constant dense<0.000000e+00> : vector<8x128xf32>
    %310 = tpu.matmul %308, %309, %cst_148 {dimension_numbers = #tpu.dot_dimension_numbers<[1], [0], [0], [1], [0, 0, 1, 1], [], []>} : vector<8x8xbf16>, vector<8x128xbf16>, vector<8x128xf32> -> vector<8x128xf32>
    %311 = arith.addf %301, %310 : vector<8x128xf32>
    %c120_i32 = arith.constant 120 : i32
    %312 = tpu.dynamic_rotate %247 by %c120_i32 dim 1 : vector<8x128xf32>, i32 -> vector<8x128xf32>
    %cst_149 = arith.constant 0.000000e+00 : f32
    %313 = vector.shape_cast %30 : vector<1x128xi1> to vector<1x128xi1>
    %314 = vector.broadcast %313 : vector<1x128xi1> to vector<8x128xi1>
    %315 = vector.broadcast %cst_149 : f32 to vector<8x128xf32>
    %316 = arith.select %314, %312, %315 : vector<8x128xi1>, vector<8x128xf32>
    %c7_150 = arith.constant 7 : index
    %c0_151 = arith.constant 0 : index
    %c0_152 = arith.constant 0 : index
    %317 = vector.load %arg8[%c7_150, %c0_151, %c0_152] : memref<9x8x8xbf16, #tpu.memory_space<vmem>>, vector<1x8x8xbf16>
    %318 = vector.shape_cast %317 : vector<1x8x8xbf16> to vector<8x8xbf16>
    %319 = arith.truncf %316 : vector<8x128xf32> to vector<8x128xbf16>
    %cst_153 = arith.constant dense<0.000000e+00> : vector<8x128xf32>
    %320 = tpu.matmul %318, %319, %cst_153 {dimension_numbers = #tpu.dot_dimension_numbers<[1], [0], [0], [1], [0, 0, 1, 1], [], []>} : vector<8x8xbf16>, vector<8x128xbf16>, vector<8x128xf32> -> vector<8x128xf32>
    %321 = arith.addf %311, %320 : vector<8x128xf32>
    %c119_i32 = arith.constant 119 : i32
    %322 = tpu.dynamic_rotate %247 by %c119_i32 dim 1 : vector<8x128xf32>, i32 -> vector<8x128xf32>
    %cst_154 = arith.constant 0.000000e+00 : f32
    %323 = vector.shape_cast %38 : vector<1x128xi1> to vector<1x128xi1>
    %324 = vector.broadcast %323 : vector<1x128xi1> to vector<8x128xi1>
    %325 = vector.broadcast %cst_154 : f32 to vector<8x128xf32>
    %326 = arith.select %324, %322, %325 : vector<8x128xi1>, vector<8x128xf32>
    %c8_155 = arith.constant 8 : index
    %c0_156 = arith.constant 0 : index
    %c0_157 = arith.constant 0 : index
    %327 = vector.load %arg8[%c8_155, %c0_156, %c0_157] : memref<9x8x8xbf16, #tpu.memory_space<vmem>>, vector<1x8x8xbf16>
    %328 = vector.shape_cast %327 : vector<1x8x8xbf16> to vector<8x8xbf16>
    %329 = arith.truncf %326 : vector<8x128xf32> to vector<8x128xbf16>
    %cst_158 = arith.constant dense<0.000000e+00> : vector<8x128xf32>
    %330 = tpu.matmul %328, %329, %cst_158 {dimension_numbers = #tpu.dot_dimension_numbers<[1], [0], [0], [1], [0, 0, 1, 1], [], []>} : vector<8x8xbf16>, vector<8x128xbf16>, vector<8x128xf32> -> vector<8x128xf32>
    %331 = arith.addf %321, %330 : vector<8x128xf32>
    %c0_159 = arith.constant 0 : index
    %c0_160 = arith.constant 0 : index
    %332 = vector.load %arg11[%c0_159, %c0_160] : memref<128x32xf32, #tpu.memory_space<vmem>>, vector<128x32xf32>
    %cst_161 = arith.constant dense<0.000000e+00> : vector<8x32xf32>
    %333 = tpu.matmul %331, %332, %cst_161 {dimension_numbers = #tpu.dot_dimension_numbers<[1], [0], [0], [1], [0, 0, 1, 1], [], []>} : vector<8x128xf32>, vector<128x32xf32>, vector<8x32xf32> -> vector<8x32xf32>
    %c0_162 = arith.constant 0 : index
    %c0_163 = arith.constant 0 : index
    %334 = vector.load %arg9[%c0_162, %c0_163] : memref<8x1xf32, #tpu.memory_space<vmem>>, vector<8x1xf32>
    %335 = vector.broadcast %334 : vector<8x1xf32> to vector<8x32xf32>
    %336 = arith.addf %333, %335 : vector<8x32xf32>
    %337 = arith.negf %247 : vector<8x128xf32>
    %338 = math.exp %337 : vector<8x128xf32>
    %cst_164 = arith.constant 1.000000e+00 : f32
    %339 = vector.broadcast %cst_164 : f32 to vector<8x128xf32>
    %340 = arith.addf %339, %338 : vector<8x128xf32>
    %341 = arith.divf %339, %340 : vector<8x128xf32>
    %342 = arith.negf %336 : vector<8x32xf32>
    %343 = math.exp %342 : vector<8x32xf32>
    %cst_165 = arith.constant 1.000000e+00 : f32
    %344 = vector.broadcast %cst_165 : f32 to vector<8x32xf32>
    %345 = arith.addf %344, %343 : vector<8x32xf32>
    %346 = arith.divf %344, %345 : vector<8x32xf32>
    %c0_166 = arith.constant 0 : index
    %c0_167 = arith.constant 0 : index
    %347 = vector.load %arg12[%c0_166, %c0_167] : memref<8x128xf32, #tpu.memory_space<vmem>>, vector<8x128xf32>
    tpu.vector_store %arg12[%c0_166, %c0_167], %341 {strides = array<i32>} : memref<8x128xf32, #tpu.memory_space<vmem>>, vector<8x128xf32>,
    %c0_168 = arith.constant 0 : index
    %c0_169 = arith.constant 0 : index
    %348 = vector.load %arg13[%c0_168, %c0_169] : memref<8x32xf32, #tpu.memory_space<vmem>>, vector<8x32xf32>
    tpu.vector_store %arg13[%c0_168, %c0_169], %346 {strides = array<i32>} : memref<8x32xf32, #tpu.memory_space<vmem>>, vector<8x32xf32>,
    return
  }
  func.func @transform_0(%arg0: i32, %arg1: memref<2xi32, #tpu.memory_space<smem>>) -> (i32, i32) {
    %c0_i32 = arith.constant 0 : i32
    %c0_i32_0 = arith.constant 0 : i32
    return %c0_i32, %arg0 : i32, i32
  }
  func.func @transform_1(%arg0: i32, %arg1: memref<2xi32, #tpu.memory_space<smem>>) -> (i32, i32, i32) {
    %c0_i32 = arith.constant 0 : i32
    %c0_i32_0 = arith.constant 0 : i32
    %c0_i32_1 = arith.constant 0 : i32
    %c0_i32_2 = arith.constant 0 : i32
    return %c0_i32, %c0_i32_0, %c0_i32_1 : i32, i32, i32
  }
  func.func @transform_2(%arg0: i32, %arg1: memref<2xi32, #tpu.memory_space<smem>>) -> (i32, i32) {
    %c0_i32 = arith.constant 0 : i32
    %c0_i32_0 = arith.constant 0 : i32
    %c0_i32_1 = arith.constant 0 : i32
    return %c0_i32, %c0_i32_0 : i32, i32
  }
  func.func @transform_3(%arg0: i32, %arg1: memref<2xi32, #tpu.memory_space<smem>>) -> (i32, i32) {
    %c0_i32 = arith.constant 0 : i32
    %c0_i32_0 = arith.constant 0 : i32
    %c0_i32_1 = arith.constant 0 : i32
    return %c0_i32, %c0_i32_0 : i32, i32
  }
  func.func @transform_4(%arg0: i32, %arg1: memref<2xi32, #tpu.memory_space<smem>>) -> (i32, i32, i32) {
    %c0_i32 = arith.constant 0 : i32
    %c0_i32_0 = arith.constant 0 : i32
    %c0_i32_1 = arith.constant 0 : i32
    %c0_i32_2 = arith.constant 0 : i32
    return %c0_i32, %c0_i32_0, %c0_i32_1 : i32, i32, i32
  }
  func.func @transform_5(%arg0: i32, %arg1: memref<2xi32, #tpu.memory_space<smem>>) -> (i32, i32) {
    %c0_i32 = arith.constant 0 : i32
    %c0_i32_0 = arith.constant 0 : i32
    %c0_i32_1 = arith.constant 0 : i32
    return %c0_i32, %c0_i32_0 : i32, i32
  }
  func.func @transform_6(%arg0: i32, %arg1: memref<2xi32, #tpu.memory_space<smem>>) -> (i32, i32, i32) {
    %c0_i32 = arith.constant 0 : i32
    %c0_i32_0 = arith.constant 0 : i32
    %c0_i32_1 = arith.constant 0 : i32
    %c0_i32_2 = arith.constant 0 : i32
    return %c0_i32, %c0_i32_0, %c0_i32_1 : i32, i32, i32
  }
  func.func @transform_7(%arg0: i32, %arg1: memref<2xi32, #tpu.memory_space<smem>>) -> (i32, i32) {
    %c0_i32 = arith.constant 0 : i32
    %c0_i32_0 = arith.constant 0 : i32
    %c0_i32_1 = arith.constant 0 : i32
    return %c0_i32, %c0_i32_0 : i32, i32
  }
  func.func @transform_8(%arg0: i32, %arg1: memref<2xi32, #tpu.memory_space<smem>>) -> (i32, i32) {
    %c0_i32 = arith.constant 0 : i32
    %c0_i32_0 = arith.constant 0 : i32
    %c0_i32_1 = arith.constant 0 : i32
    return %c0_i32, %c0_i32_0 : i32, i32
  }
  func.func @transform_9(%arg0: i32, %arg1: memref<2xi32, #tpu.memory_space<smem>>) -> (i32, i32) {
    %c0_i32 = arith.constant 0 : i32
    %c0_i32_0 = arith.constant 0 : i32
    %c0_i32_1 = arith.constant 0 : i32
    return %c0_i32, %c0_i32_0 : i32, i32
  }
  func.func @transform_10(%arg0: i32, %arg1: memref<2xi32, #tpu.memory_space<smem>>) -> (i32, i32) {
    %c0_i32 = arith.constant 0 : i32
    %c0_i32_0 = arith.constant 0 : i32
    return %c0_i32, %arg0 : i32, i32
  }
  func.func @transform_11(%arg0: i32, %arg1: memref<2xi32, #tpu.memory_space<smem>>) -> (i32, i32) {
    %c0_i32 = arith.constant 0 : i32
    %c0_i32_0 = arith.constant 0 : i32
    return %c0_i32, %arg0 : i32, i32
  }
}

</mosaic_0001>

<bundles_post_ra>
// kernel: _lambda_.1
= control target key start
LH: loop header
LB: loop body
LE: loop exit
PB: predicated region body
PF: predicated region fallthrough
CT: control target
= control target key end

     0   :  { %s5382_s0 = inlined_call_operand.vmem [shape: s32[2], index: 0, kind: input, shape index: {}]   ;;  %s5383_s1 = inlined_call_operand.vmem [shape: f32[4,512], index: 1, kind: input, shape index: {}]   ;;  %s5384_s2 = inlined_call_operand.vmem [shape: bf16[9,8,4], index: 2, kind: input, shape index: {}]   ;;  %s5385_s3 = inlined_call_operand.vmem [shape: f32[8,1], index: 3, kind: input, shape index: {}]   ;;  %s5386_s4 = inlined_call_operand.vmem [shape: f32[8,3], index: 4, kind: input, shape index: {}]   ;;  %s5387_s5 = inlined_call_operand.vmem [shape: bf16[9,8,8], index: 5, kind: input, shape index: {}]   ;;  %s5388_s6 = inlined_call_operand.vmem [shape: f32[8,1], index: 6, kind: input, shape index: {}]   ;;  %s5389_s7 = inlined_call_operand.vmem [shape: bf16[9,8,8], index: 7, kind: input, shape index: {}]   ;;  %s5390_s8 = inlined_call_operand.vmem [shape: f32[8,1], index: 8, kind: input, shape index: {}]   ;;  %s5391_s9 = inlined_call_operand.vmem [shape: f32[512,128], index: 9, kind: input, shape index: {}]   ;;  %s5392_s10 = inlined_call_operand.vmem [shape: f32[128,32], index: 10, kind: input, shape index: {}]   ;;  %s5393_s11 = inlined_call_operand.vmem [shape: f32[8,128], index: 11, kind: output, shape index: {0}]   ;;  %s5394_s12 = inlined_call_operand.vmem [shape: f32[8,32], index: 12, kind: output, shape index: {1}]  }
   0x1   :  { %s18_s23 = sshll.u32 %s5382_s0, 4  ;;  %s19_s23 = int_to_ptr.vmem [resolvable:$true] %s18_s23 }
   0x2   :  { %s3991_s24 = scalar_lea.vmem %s19_s23, 16  ;;  %p3996_p1 = scmp.lt.s32.totalorder %s19_s23, %s19_s23 }
   0x3   :  { %p3992_p0 = scmp.ne.s32.totalorder %s19_s23, %s3991_s24  ;;  %p3997_p2 = scmp.lt.s32.totalorder %s3991_s24, %s3991_s24 }
   0x5   :  { %p3998_p3 = por %p3997_p2, %p3996_p1 }
   0x7   :  { %p3999_p4 = pnand %p3998_p3, %p3992_p0 }
   0x9   :  { %4002 = shalt.err (!%p3999_p4)  }
   0xa   :  { %s4005_s25 = smov [#allocation3]  }
   0xb   :  { %21 = dma.vmem_to_smem %s19_s23, 16, %s4005_s25, [#allocation2] }
   0xc   :  { %4003 = dma.done.wait [#allocation2], 16 }
   0xd   :  { %4004 = vsyncadd [#allocation2], 4294967280 }
   0xe   :  { %23 = sfence }
   0xf   :  { %v4095_v0 = vld [vmem:[%s5383_s1] sm:$0xff]  ;;  %v4100_v1 = vld [vmem:[%s5383_s1 + $0x8] sm:$0xff]  ;;  %s4006_s29 = smov 16   ;;  %v4007_v4 = vmov 0   ;;  %s4008_s1 = smov 17   ;;  %v47_v9 = vlaneseq  ;;  %v5428_v30 = vmov 0 }
  0x10   :  { %v4104_v2 = vcombine.high %v4095_v0, %v4095_v0  ;;  %147 = vrot.lane.b32.xlu1 %v4100_v1, %s4006_s29  ;;  %223 = vmatprep.mubr.bf16.mxu1 %v4007_v4  ;;  %v4116_v5 = vcombine.high %v4100_v1, %v4100_v1  ;;  %s4009_s30 = smov 15   ;;  %s4010_s13 = smov 1   ;;  %v3919_v7 = vpack.i.bf16 %v4100_v1, %v4095_v0  ;;  %v1269_v8 = vld [vmem:[%s5385_s3] sm:$0xff]  ;;  %vm5402_vm7 = vcmask 1041408  }
  0x11   :  { %448 = vmatprep.mubr.bf16.mxu0 %v4007_v4  ;;  %3939 = vset.pattern.permute.xlu0 %v4007_v4  ;;  %s4011_s14 = smov 127   ;;  %s4012_s15 = smov 113   ;;  %v4164_v10 = vand.u32 127, %v47_v9  ;;  %v5434_v53 = vmov 0  ;;  %v3384_v57 = vld [vmem:[%s5384_s2 + $0x4] sm:$0xf] }
  0x12   :  { %v3899_v3 = vpack.i.bf16 %v4104_v2, %v4095_v0  ;;  %3980 = vset.pattern.permute.xlu1 %v4007_v4  ;;  %v3909_v6 = vpack.i.bf16 %v4100_v1, %v4104_v2  ;;  %s4013_s16 = smov 112   ;;  %s4014_s17 = smov 111   ;;  %vm5398_vm12 = vcmask 31744   ;;  %v5438_v59 = vmov 0 }
  0x13   :  { %v4167_v11 = vadd.s32 128, %v4164_v10  ;;  %v4170_v12 = vadd.s32 256, %v4164_v10  ;;  %v4173_v13 = vadd.s32 384, %v4164_v10  ;;  %v52_v15 = vand.u32 255, %v4164_v10  ;;  %s1288_s22 = sld [smem:[#allocation3]]  ;;  %s3428_s23 = sld [smem:[#allocation3 + $0x1]] }
  0x14   :  { %3900 = vrot.lane.b32.xlu0 %v3899_v3, %s4006_s29  ;;  %3905 = vrot.lane.b32.xlu1 %v3899_v3, %s4008_s1  ;;  %vm5395_vm0 = vcmp.lt.s32.totalorder %v4164_v10, 16  ;;  %vm5399_vm3 = vcmp.lt.s32.totalorder %v4164_v10, 17  ;;  %v60_v31 = vand.u32 15, %v4164_v10  ;;  %v5440_v3 = vmov 0  ;;  %s4018_s18 = smov 8   ;;  %s4019_s19 = smov 7  }
  0x15   :  { %v53_v14 = vand.u32 255, %v4167_v11  ;;  %v54_v16 = vand.u32 255, %v4170_v12  ;;  %v55_v17 = vand.u32 255, %v4173_v13  ;;  %v4181_v20 = vshra.s32 %v52_v15, 4  ;;  %s4020_s3 = smov 121   ;;  %s4021_s20 = smov 119  }
  0x16   :  { %v61_v24 = vand.u32 15, %v4167_v11  ;;  %vm4209_vm8 = vcmp.ge.s32.totalorder %v60_v31, 1  ;;  %v63_v46 = vand.u32 15, %v4173_v13  ;;  %v62_v58 = vand.u32 15, %v4170_v12  ;;  %s4022_s21 = smov 120  }
  0x17   :  { %v4179_v19 = vshra.s32 %v53_v14, 4  ;;  %v4183_v21 = vshra.s32 %v54_v16, 4  ;;  %v4185_v22 = vshra.s32 %v55_v17, 4  ;;  %vm5401_vm4 = vcmp.ge.s32.totalorder %v4181_v20, 1 }
  0x18   :  { %149 = vrot.lane.b32.xlu0 %v4116_v5, %s4006_s29  ;;  %117 = vrot.lane.b32.xlu1 %v4100_v1, %s4008_s1  ;;  %vm4194_vm2 = vcmp.ge.s32.totalorder %v61_v24, 1  ;;  %vm4243_vm10 = vmand %vm5401_vm4, %vm4209_vm8  ;;  %vm4250_vm11 = vcmp.ge.s32.totalorder %v63_v46, 1  ;;  %vm4259_vm13 = vcmp.le.s32.totalorder %v61_v24, 14  ;;  %vm4267_vm14 = vcmp.le.s32.totalorder %v60_v31, 14 }
  0x19   :  { %vm5400_vm1 = vcmp.ge.s32.totalorder %v4179_v19, 1  ;;  %v5429_v30 = vsel %vm4194_vm2, 4294967295, %v5428_v30  ;;  %vm5396_vm5 = vcmp.ge.s32.totalorder %v4183_v21, 1  ;;  %vm5397_vm6 = vcmp.ge.s32.totalorder %v4185_v22, 1 }
  0x1a   :  { %vm4221_vm9 = vmand %vm5400_vm1, %vm4194_vm2  ;;  %v5435_v53 = vsel %vm4243_vm10, 4294967295, %v5434_v53  ;;  %v5439_v59 = vsel %vm4259_vm13, 4294967295, %v5438_v59  ;;  %v5441_v3 = vsel %vm4267_vm14, 4294967295, %v5440_v3  ;;  %v5444_v16 = vmov 0 }
  0x1b   :  { %vm4275_vm15 = vmand %vm5397_vm6, %vm4250_vm11 }
  0x1c   :  { %119 = vrot.lane.b32.xlu0 %v4116_v5, %s4008_s1  ;;  %376 = vrot.lane.b32.xlu1 %v4116_v5, %s4009_s30 }
  0x20   :  { %3910 = vrot.lane.b32.xlu0 %v3909_v6, %s4009_s30  ;;  %3915 = vrot.lane.b32.xlu1 %v3909_v6, %s4010_s13  ;;  %v5442_v6 = vmov 0 }
  0x21   :  { %v5443_v6 = vsel %vm4275_vm15, 4294967295, %v5442_v6 }
  0x24   :  { %370 = vrot.lane.b32.xlu0 %v4095_v0, %s4009_s30  ;;  %502 = vrot.lane.b32.xlu1 %v4095_v0, %s4010_s13 }
  0x28   :  { %508 = vrot.lane.b32.xlu0 %v4116_v5, %s4010_s13  ;;  %747 = vrot.lane.b32.xlu1 %v4116_v5, %s4011_s14 }
  0x2c   :  { %3920 = vrot.lane.b32.xlu0 %v3919_v7, %s4011_s14  ;;  %3925 = vrot.lane.b32.xlu1 %v3919_v7, %s4012_s15 }
  0x30   :  { %743 = vrot.lane.b32.xlu0 %v4104_v2, %s4011_s14  ;;  %875 = vrot.lane.b32.xlu1 %v4104_v2, %s4012_s15 }
  0x34   :  { %879 = vrot.lane.b32.xlu0 %v4116_v5, %s4012_s15  ;;  %1011 = vrot.lane.b32.xlu1 %v4116_v5, %s4013_s16 }
  0x38   :  { %3930 = vrot.lane.b32.xlu0 %v3919_v7, %s4013_s16  ;;  %3935 = vrot.lane.b32.xlu1 %v3919_v7, %s4014_s17 }
  0x3c   :  { %1007 = vrot.lane.b32.xlu0 %v4104_v2, %s4013_s16  ;;  %1139 = vrot.lane.b32.xlu1 %v4104_v2, %s4014_s17 }
  0x40   :  { %1143 = vrot.lane.b32.xlu0 %v4116_v5, %s4014_s17 }
  0x44   :  { %1272 = vperm.xlu0 %3939, %v1269_v8  }
  0x82   :  { %v148_v18 = vpop.permute.xlu1 %147 }
  0x86   :  { %v3901_v23 = vpop.permute.xlu0 %3900  ;;  %v4190_v25 = vpop.permute.xlu1 %3905 }
  0x87   :  { %v3903_v26 = vunpack.i.h.bf16 %v3901_v23  ;;  %v3902_v27 = vunpack.i.l.bf16 %v3901_v23  ;;  %v3908_v28 = vunpack.i.h.bf16 %v4190_v25  ;;  %v3907_v29 = vunpack.i.l.bf16 %v4190_v25 }
  0x88   :  { %v5448_v23 = vmov 0 }
  0x89   :  { %v153_v32 = vsel %vm5395_vm0, %v3903_v26, %v148_v18  ;;  %v154_v33 = vsel %vm5395_vm0, %v3902_v27, %v3903_v26  ;;  %v124_v42 = vsel %vm5399_vm3, %v3907_v29, %v3908_v28 }
  0x8a   :  { %v150_v34 = vpop.permute.xlu0 %149  ;;  %v165_v35 = vsel %vm5400_vm1, %v154_v33, 0.0  ;;  %v118_v37 = vpop.permute.xlu1 %117  ;;  %v166_v43 = vsel %vm5396_vm5, %v153_v32, 0.0  ;;  %v135_v48 = vsel %vm4221_vm9, %v124_v42, 0.0  ;;  %vm5404_vm5 = vcmp.lt.s32.totalorder %v4164_v10, 1 }
  0x8b   :  { %v152_v38 = vsel %vm5395_vm0, %v148_v18, %v150_v34  ;;  %v155_v39 = vsel %vm5395_vm0, %v150_v34, %v3902_v27  ;;  %v171_v40 = vpack.c.bf16 %v165_v35, %v165_v35  ;;  %v172_v51 = vpack.c.bf16 %v166_v43, %v166_v43 }
  0x8c   :  { %v167_v44 = vsel %vm5397_vm6, %v152_v38, 0.0  ;;  %v164_v45 = vsel %vm5401_vm4, %v155_v39, 0.0  ;;  %v140_v60 = vpack.c.bf16 %v135_v48, %v135_v48  ;;  %vm5408_vm0 = vcmp.lt.s32.totalorder %v4164_v10, 15  ;;  %vm4291_vm6 = vmand %vm5400_vm1, %vm4259_vm13 }
  0x8d   :  { %3385 = vmatprep.subr.msk.bf16.mxu1 %vm5402_vm7, %v171_v40  ;;  %v170_v47 = vpack.c.bf16 %v164_v45, %v164_v45  ;;  %v173_v52 = vpack.c.bf16 %v167_v44, %v167_v44  ;;  %v186_v14 = vsel %vm5402_vm7, %v172_v51, 0  ;;  %v5445_v16 = vsel %vm4291_vm6, 4294967295, %v5444_v16 }
  0x8e   :  { %v120_v49 = vpop.permute.xlu0 %119  ;;  %v377_v50 = vpop.permute.xlu1 %376  ;;  %vm4310_vm1 = vcmp.le.s32.totalorder %v63_v46, 14 }
  0x8f   :  { %v125_v54 = vsel %vm5399_vm3, %v120_v49, %v3907_v29  ;;  %v180_v55 = vsel %vm5402_vm7, %v170_v47, 0  ;;  %v122_v7 = vsel %vm5399_vm3, %v118_v37, %v120_v49  ;;  %vm4303_vm3 = vmand %vm5401_vm4, %vm4267_vm14  ;;  %vm5452_vm4 = vcmp.ge.s32.totalorder %v4183_v21, 1 }
  0x90   :  { %192 = vmatpush1.bf16.msra.mxu1 %v180_v55  ;;  %v134_v61 = vsel %vm4243_vm10, %v125_v54, 0.0  ;;  %v5449_v23 = vsel %vm4303_vm3, 4294967295, %v5448_v23  ;;  %v137_v24 = vsel %vm4275_vm15, %v122_v7, 0.0  ;;  %vm5455_vm15 = vcmp.lt.s32.totalorder %v4164_v10, 17  ;;  %v4365_v55 = vld [vmem:[%s5384_s2 + $0x8] sm:$0xf] }
  0x91   :  { %3387 = vmatprep.subr.msk.bf16.mxu1 %vm5402_vm7, %v173_v52  ;;  %v139_v17 = vpack.c.bf16 %v134_v61, %v134_v61  ;;  %v123_v38 = vsel %vm5455_vm15, %v3908_v28, %v118_v37  ;;  %v142_v43 = vpack.c.bf16 %v137_v24, %v137_v24  ;;  %vm5457_vm15 = vcmp.ge.s32.totalorder %v4185_v22, 1 }
  0x92   :  { %v3911_v62 = vpop.permute.xlu0 %3910  ;;  %v4265_v63 = vpop.permute.xlu1 %3915  ;;  %v5458_v37 = vmov 0  ;;  %vm5462_vm10 = vcmp.lt.s32.totalorder %v4164_v10, 1 }
  0x93   :  { %v3912_v8 = vunpack.i.l.bf16 %v3911_v62  ;;  %3386 = vmatmul.mubr.msk.bf16.vlgmr.msra.gmra.mrb[0].mxu1 %vm5398_vm12, %v3384_v57  ;;  %v3917_v15 = vunpack.i.l.bf16 %v4265_v63  ;;  %vm4295_vm12 = vcmp.ge.s32.totalorder %v62_v58, 1  ;;  %v3913_v31 = vunpack.i.h.bf16 %v3911_v62 }
  0x94   :  { %233 = vmatpush1.bf16.msra.mxu1 %v186_v14  ;;  %264 = vmatprep.mubr.bf16.mxu1 %v4007_v4  ;;  %v3918_v7 = vunpack.i.h.bf16 %v4265_v63 }
  0x95   :  { %3389 = vmatprep.subr.msk.bf16.mxu1 %vm5402_vm7, %v140_v60  ;;  %vm4326_vm7 = vmand %vm5452_vm4, %vm4295_vm12  ;;  %vm5456_vm4 = vcmask 1041408   ;;  %v379_v49 = vsel %vm5408_vm0, %v3913_v31, %v377_v50  ;;  %v637_v60 = vpack.c.bf16 %v4104_v2, %v4104_v2 }
  0x96   :  { %v371_v27 = vpop.permute.xlu0 %370  ;;  %v503_v29 = vpop.permute.xlu1 %502  ;;  %v277_v46 = vsel %vm5456_vm4, %v139_v17, 0  ;;  %v136_v28 = vsel %vm4326_vm7, %v123_v38, 0.0  ;;  %v380_v17 = vsel %vm5408_vm0, %v3912_v8, %v3913_v31 }
  0x97   :  { %v381_v32 = vsel %vm5408_vm0, %v371_v27, %v3912_v8  ;;  %v382_v33 = vsel %vm5408_vm0, %v377_v50, %v371_v27  ;;  %v513_v34 = vsel %vm5404_vm5, %v503_v29, %v3917_v15  ;;  %vm4349_vm5 = vmand %vm5457_vm15, %vm4310_vm1  ;;  %vm4367_vm15 = vcmp.le.s32.totalorder %v62_v58, 14  ;;  %v138_v8 = vld [vmem:[%s5384_s2] sm:$0xf] }
  0x98   :  { %v392_v39 = vsel %vm4291_vm6, %v381_v32, 0.0  ;;  %v391_v40 = vsel %vm4303_vm3, %v382_v33, 0.0  ;;  %v524_v42 = vsel %vm4194_vm2, %v513_v34, 0.0  ;;  %v5459_v37 = vsel %vm4349_vm5, 4294967295, %v5458_v37  ;;  %vm5461_vm6 = vmmov %vm5456_vm4 }
  0x99   :  { %v398_v44 = vpack.c.bf16 %v392_v39, %v392_v39  ;;  %v397_v45 = vpack.c.bf16 %v391_v40, %v391_v40  ;;  %v530_v47 = vpack.c.bf16 %v524_v42, %v524_v42  ;;  %vm5460_vm3 = vcmask 31744  }
  0x9a   :  { %v509_v48 = vpop.permute.xlu0 %508  ;;  %v4341_v25 = vpop.permute.xlu1 %747  ;;  %v5463_v50 = vmov 0  ;;  %v141_v61 = vpack.c.bf16 %v136_v28, %v136_v28  ;;  %v394_v62 = vsel %vm4349_vm5, %v379_v49, 0.0  ;;  %v636_v32 = vpack.c.bf16 %v4095_v0, %v4095_v0 }
  0x9b   :  { %3388 = vmatmul.mubr.msk.bf16.vlgmr.msra.gmra.mrb[4].mxu1 %vm5460_vm3, %v3384_v57  ;;  %3394 = vmatprep.subr.msk.bf16.mxu0 %vm5456_vm4, %v398_v44  ;;  %v405_v51 = vsel %vm5461_vm6, %v397_v45, 0  ;;  %v514_v52 = vsel %vm5462_vm10, %v509_v48, %v503_v29  ;;  %v5464_v50 = vsel %vm4367_vm15, 4294967295, %v5463_v50  ;;  %vm5465_vm3 = vmmov %vm5456_vm4  ;;  %vm5467_vm10 = vcmask 31744   ;;  %v1503_v29 = vld [vmem:[%s5387_s5] sm:$0xf] }
  0x9c   :  { %417 = vmatpush1.bf16.msra.mxu0 %v405_v51  ;;  %v523_v54 = vsel %vm4209_vm8, %v514_v52, 0.0  ;;  %289 = vmatpush1.bf16.msra.mxu1 %v277_v46  ;;  %vm5466_vm6 = vmmov %vm5465_vm3  ;;  %v400_v31 = vpack.c.bf16 %v394_v62, %v394_v62  ;;  %vm5474_vm5 = vcmask 31744  }
  0x9d   :  { %v529_v57 = vpack.c.bf16 %v523_v54, %v523_v54  ;;  %3391 = vmatprep.subr.msk.bf16.mxu1 %vm5465_vm3, %v142_v43  ;;  %320 = vmatprep.mubr.bf16.mxu1 %v4007_v4  ;;  %vm5468_vm4 = vmmov %vm5465_vm3  ;;  %vm5469_vm3 = vcmp.ge.s32.totalorder %v4183_v21, 1  ;;  %v4424_v43 = vld [vmem:[%s5384_s2 + $0xc] sm:$0xf] }
  0x9e   :  { %3399 = vmatprep.subr.msk.bf16.mxu0 %vm5466_vm6, %v530_v47  ;;  %v4379_v58 = vpop.permute.xlu0 %3920  ;;  %v4381_v14 = vpop.permute.xlu1 %3925  ;;  %vm4394_vm6 = vmand %vm5469_vm3, %vm4367_vm15  ;;  %vm5473_vm3 = vcmp.lt.s32.totalorder %v4164_v10, 1  ;;  %v644_v46 = vsel %vm5468_vm4, %v636_v32, 0 }
  0x9f   :  { %3395 = vmatmul.mubr.msk.bf16.vlgmr.msra.gmra.mrb[0].mxu0 %vm5467_vm10, %v4365_v55  ;;  %v537_v2 = vsel %vm5468_vm4, %v529_v57, 0  ;;  %v3923_v24 = vunpack.i.h.bf16 %v4379_v58  ;;  %v3922_v27 = vunpack.i.l.bf16 %v4379_v58  ;;  %vm5410_vm10 = vcmp.lt.s32.totalorder %v4164_v10, 127  ;;  %vm5472_vm0 = vmmov %vm5468_vm4 }
  0xa0   :  { %549 = vmatpush1.bf16.msra.mxu0 %v537_v2  ;;  %580 = vmatprep.mubr.bf16.mxu0 %v4007_v4  ;;  %v283_v33 = vsel %vm5472_vm0, %v141_v61, 0  ;;  %v393_v38 = vsel %vm4394_vm6, %v380_v17, 0.0  ;;  %v511_v39 = vsel %vm5473_vm3, %v3918_v7, %v509_v48  ;;  %v3928_v42 = vunpack.i.h.bf16 %v4381_v14  ;;  %vm5475_vm3 = vmmov %vm5468_vm4 }
  0xa1   :  { %3404 = vmatprep.subr.msk.bf16.mxu0 %vm5468_vm4, %v637_v60  ;;  %vm5411_vm0 = vcmp.le.s32.totalorder %v4179_v19, 14  ;;  %v399_v48 = vpack.c.bf16 %v393_v38, %v393_v38  ;;  %v526_v28 = vsel %vm4250_vm11, %v511_v39, 0.0  ;;  %v3927_v54 = vunpack.i.l.bf16 %v4381_v14 }
  0xa2   :  { %v744_v34 = vpop.permute.xlu0 %743  ;;  %v876_v45 = vpop.permute.xlu1 %875  ;;  %vm4450_vm4 = vmand %vm5411_vm0, %vm4194_vm2  ;;  %v5477_v57 = vmov 0  ;;  %v532_v60 = vpack.c.bf16 %v526_v28, %v526_v28  ;;  %v639_v28 = vpack.c.bf16 %v4116_v5, %v4116_v5  ;;  %v4526_v5 = vld [vmem:[%s5384_s2 + $0x14] sm:$0xf] }
  0xa3   :  { %3390 = vmatmul.mubr.msk.bf16.vlgmr.msra.gmra.mrb[8].mxu1 %vm5474_vm5, %v138_v8  ;;  %v751_v40 = vsel %vm5410_vm10, %v744_v34, %v3923_v24  ;;  %v752_v0 = vsel %vm5410_vm10, %v3922_v27, %v744_v34  ;;  %vm5476_vm10 = vcmp.lt.s32.totalorder %v4164_v10, 1  ;;  %v5478_v57 = vsel %vm4450_vm4, 4294967295, %v5477_v57  ;;  %v4487_v34 = vld [vmem:[%s5384_s2 + $0x10] sm:$0xf] }
  0xa4   :  { %330 = vmatpush1.bf16.msra.mxu1 %v283_v33  ;;  %361 = vmatprep.mubr.bf16.mxu1 %v4007_v4  ;;  %v763_v44 = vsel %vm4259_vm13, %v751_v40, 0.0  ;;  %v762_v49 = vsel %vm4267_vm14, %v752_v0, 0.0  ;;  %v512_v52 = vsel %vm5476_vm10, %v3917_v15, %v3918_v7  ;;  %vm5413_vm10 = vcmp.le.s32.totalorder %v4181_v20, 14 }
  0xa5   :  { %v769_v47 = vpack.c.bf16 %v763_v44, %v763_v44  ;;  %3396 = vmatprep.subr.msk.bf16.mxu1 %vm5475_vm3, %v400_v31  ;;  %vm5479_vm3 = vcmp.lt.s32.totalorder %v4164_v10, 113  ;;  %v768_v61 = vpack.c.bf16 %v762_v49, %v762_v49  ;;  %v525_v17 = vsel %vm4295_vm12, %v512_v52, 0.0  ;;  %vm4475_vm2 = vmand %vm5413_vm10, %vm4209_vm8 }
  0xa6   :  { %v4437_v51 = vpop.permute.xlu0 %879  ;;  %v883_v63 = vsel %vm5479_vm3, %v876_v45, %v3928_v42  ;;  %v4460_v15 = vpop.permute.xlu1 %1011  ;;  %vm5482_vm3 = vcmask 31744   ;;  %v5483_v31 = vmov 0  ;;  %v531_v39 = vpack.c.bf16 %v525_v17, %v525_v17 }
  0xa7   :  { %3400 = vmatmul.mubr.msk.bf16.vlgmr.msra.gmra.mrb[4].mxu0 %vm5474_vm5, %v4424_v43  ;;  %vm5480_vm5 = vcmask 1041408   ;;  %v895_v7 = vsel %vm4450_vm4, %v883_v63, 0.0  ;;  %v5484_v31 = vsel %vm4475_vm2, 4294967295, %v5483_v31 }
  0xa8   :  { %656 = vmatpush1.bf16.msra.mxu0 %v644_v46  ;;  %687 = vmatprep.mubr.bf16.mxu0 %v4007_v4  ;;  %v411_v62 = vsel %vm5480_vm5, %v399_v48, 0  ;;  %vm5481_vm0 = vmmov %vm5480_vm5  ;;  %vm5415_vm5 = vcmp.lt.s32.totalorder %v4164_v10, 112  ;;  %v901_v38 = vpack.c.bf16 %v895_v7, %v895_v7 }
  0xa9   :  { %3409 = vmatprep.subr.msk.bf16.mxu0 %vm5481_vm0, %v769_v47  ;;  %vm5485_vm0 = vcmp.lt.s32.totalorder %v4164_v10, 113 }
  0xaa   :  { %v4468_v2 = vpop.permute.xlu0 %3930  ;;  %v884_v32 = vsel %vm5485_vm0, %v3927_v54, %v876_v45  ;;  %v4495_v44 = vpop.permute.xlu1 %3935  ;;  %vm5488_vm0 = vcmask 31744  }
  0xab   :  { %3392 = vmatmul.mubr.msk.bf16.vlgmr.msra.gmra.mrb[12].mxu1 %vm5482_vm3, %v138_v8  ;;  %v3933_v33 = vunpack.i.h.bf16 %v4468_v2  ;;  %vm5486_vm3 = vcmask 1041408   ;;  %v894_v40 = vsel %vm4475_vm2, %v884_v32, 0.0  ;;  %v3932_v45 = vunpack.i.l.bf16 %v4468_v2 }
  0xac   :  { %458 = vmatpush1.bf16.msra.mxu1 %v411_v62  ;;  %489 = vmatprep.mubr.bf16.mxu1 %v4007_v4  ;;  %v776_v8 = vsel %vm5486_vm3, %v768_v61, 0  ;;  %vm5487_vm10 = vmmov %vm5486_vm3  ;;  %v900_v47 = vpack.c.bf16 %v894_v40, %v894_v40  ;;  %vm5491_vm2 = vcmp.lt.s32.totalorder %v4164_v10, 127  ;;  %v638_v62 = vpack.c.bf16 %v4100_v1, %v4100_v1 }
  0xad   :  { %3401 = vmatprep.subr.msk.bf16.mxu1 %vm5487_vm10, %v532_v60  ;;  %vm5489_vm10 = vmmov %vm5486_vm3  ;;  %v753_v52 = vsel %vm5491_vm2, %v4341_v25, %v3922_v27  ;;  %v3938_v60 = vunpack.i.h.bf16 %v4495_v44  ;;  %v5499_v1 = vmov 0  ;;  %v5504_v40 = vmov 0 }
  0xae   :  { %v1008_v0 = vpop.permute.xlu0 %1007  ;;  %v543_v48 = vsel %vm5489_vm10, %v531_v39, 0  ;;  %vm5493_vm10 = vcmp.lt.s32.totalorder %v4164_v10, 112  ;;  %v1140_v27 = vpop.permute.xlu1 %1139  ;;  %v765_v7 = vsel %vm4310_vm1, %v753_v52, 0.0 }
  0xaf   :  { %3405 = vmatmul.mubr.msk.bf16.vlgmr.msra.gmra.mrb[8].mxu0 %vm5488_vm0, %v4487_v34  ;;  %v1015_v46 = vsel %vm5415_vm5, %v1008_v0, %v3933_v33  ;;  %vm5490_vm0 = vcmp.le.s32.totalorder %v4179_v19, 14  ;;  %vm5492_vm5 = vcmask 31744   ;;  %v1016_v63 = vsel %vm5493_vm10, %v3932_v45, %v1008_v0  ;;  %vm5496_vm10 = vmmov %vm5491_vm2 }
  0xb0   :  { %788 = vmatpush1.bf16.msra.mxu0 %v776_v8  ;;  %819 = vmatprep.mubr.bf16.mxu0 %v4007_v4  ;;  %v1027_v49 = vsel %vm5490_vm0, %v1015_v46, 0.0  ;;  %vm5495_vm0 = vcmp.le.s32.totalorder %v4181_v20, 14  ;;  %v750_v32 = vsel %vm5496_vm10, %v3923_v24, %v4341_v25  ;;  %vm5497_vm2 = vcmask 31744  }
  0xb1   :  { %3414 = vmatprep.subr.msk.bf16.mxu0 %vm5486_vm3, %v901_v38  ;;  %v1033_v61 = vpack.c.bf16 %v1027_v49, %v1027_v49  ;;  %v1026_v17 = vsel %vm5495_vm0, %v1016_v63, 0.0  ;;  %v3937_v8 = vunpack.i.l.bf16 %v4495_v44  ;;  %vm5501_vm0 = vcmp.lt.s32.totalorder %v4164_v10, 111 }
  0xb2   :  { %v1147_v25 = vsel %vm5501_vm0, %v1140_v27, %v3938_v60  ;;  %v771_v58 = vpack.c.bf16 %v765_v7, %v765_v7  ;;  %v1032_v24 = vpack.c.bf16 %v1026_v17, %v1026_v17  ;;  %v764_v39 = vsel %vm4367_vm15, %v750_v32, 0.0 }
  0xb3   :  { %3397 = vmatmul.mubr.msk.bf16.vlgmr.msra.gmra.mrb[16].mxu1 %vm5492_vm5, %v4365_v55  ;;  %v908_v55 = vsel %vm5486_vm3, %v900_v47, 0  ;;  %vm5494_vm5 = vmmov %vm5486_vm3  ;;  %vm5417_vm3 = vcmp.le.s32.totalorder %v4185_v22, 14  ;;  %vm5506_vm0 = vcmp.lt.s32.totalorder %v4164_v10, 113  ;;  %v5509_v47 = vmov 0 }
  0xb4   :  { %590 = vmatpush1.bf16.msra.mxu1 %v543_v48  ;;  %621 = vmatprep.mubr.bf16.mxu1 %v4007_v4  ;;  %v885_v46 = vsel %vm5506_vm0, %v4437_v51, %v3927_v54  ;;  %v3413_v54 = vld [vmem:[%s5384_s2 + $0x18] sm:$0xf]  ;;  %vm5512_vm0 = vcmask 1041408   ;;  %v1286_v44 = vshra.s32 %v4173_v13, 8 }
  0xb5   :  { %3406 = vmatprep.subr.msk.bf16.mxu1 %vm5494_vm5, %v639_v28  ;;  %vm5498_vm5 = vcmp.le.s32.totalorder %v4179_v19, 14  ;;  %v1040_v28 = vsel %vm5512_vm0, %v1032_v24, 0 }
  0xb6   :  { %vm4551_vm4 = vmand %vm5498_vm5, %vm4259_vm13  ;;  %vm5511_vm13 = vcmp.lt.s32.totalorder %v4164_v10, 111 }
  0xb7   :  { %3410 = vmatmul.mubr.msk.bf16.vlgmr.msra.gmra.mrb[12].mxu0 %vm5497_vm2, %v4526_v5  ;;  %v5500_v1 = vsel %vm4551_vm4, 4294967295, %v5499_v1  ;;  %vm5502_vm2 = vcmask 1041408   ;;  %vm4568_vm5 = vmand %vm5417_vm3, %vm4250_vm11  ;;  %v1159_v0 = vsel %vm4551_vm4, %v1147_v25, 0.0  ;;  %v1148_v48 = vsel %vm5511_vm13, %v3937_v8, %v1140_v27 }
  0xb8   :  { %920 = vmatpush1.bf16.msra.mxu0 %v908_v55  ;;  %951 = vmatprep.mubr.bf16.mxu0 %v4007_v4  ;;  %v650_v38 = vsel %vm5502_vm2, %v638_v62, 0  ;;  %vm5503_vm10 = vmmov %vm5502_vm2  ;;  %v5505_v40 = vsel %vm4568_vm5, 4294967295, %v5504_v40  ;;  %vm5507_vm2 = vcmask 31744   ;;  %vm5421_vm4 = vcmp.le.s32.totalorder %v4183_v21, 14 }
  0xb9   :  { %3419 = vmatprep.subr.msk.bf16.mxu0 %vm5503_vm10, %v1033_v61  ;;  %vm5508_vm10 = vcmp.le.s32.totalorder %v4181_v20, 14  ;;  %v1165_v49 = vpack.c.bf16 %v1159_v0, %v1159_v0  ;;  %v897_v52 = vsel %vm4568_vm5, %v885_v46, 0.0  ;;  %vm4606_vm13 = vmand %vm5421_vm4, %vm4295_vm12  ;;  %v5514_v27 = vmov 0 }
  0xba   :  { %vm4585_vm3 = vmand %vm5508_vm10, %vm4267_vm14  ;;  %v5515_v27 = vsel %vm4606_vm13, 4294967295, %v5514_v27  ;;  %vm5516_vm10 = vcmp.lt.s32.totalorder %v4164_v10, 113  ;;  %v903_v61 = vpack.c.bf16 %v897_v52, %v897_v52  ;;  %vm5519_vm4 = vcmp.lt.s32.totalorder %v4164_v10, 112 }
  0xbb   :  { %3402 = vmatmul.mubr.msk.bf16.vlgmr.msra.gmra.mrb[20].mxu1 %vm5507_vm2, %v4424_v43  ;;  %v5510_v47 = vsel %vm4585_vm3, 4294967295, %v5509_v47  ;;  %v770_v43 = vpack.c.bf16 %v764_v39, %v764_v39  ;;  %vm5513_vm2 = vmmov %vm5512_vm0  ;;  %v1158_v63 = vsel %vm4585_vm3, %v1148_v48, 0.0  ;;  %v882_v55 = vsel %vm5516_vm10, %v3928_v42, %v4437_v51  ;;  %v3418_v42 = vld [vmem:[%s5384_s2 + $0x1c] sm:$0xf] }
  0xbc   :  { %697 = vmatpush1.bf16.msra.mxu1 %v650_v38  ;;  %728 = vmatprep.mubr.bf16.mxu1 %v4007_v4  ;;  %vm5517_vm0 = vcmask 31744   ;;  %v1164_v62 = vpack.c.bf16 %v1158_v63, %v1158_v63  ;;  %vm5518_vm3 = vmmov %vm5513_vm2  ;;  %v896_v17 = vsel %vm4606_vm13, %v882_v55, 0.0  ;;  %v1017_v14 = vsel %vm5519_vm4, %v4460_v15, %v3932_v45  ;;  %v1144_v45 = vpop.permute.xlu0 %1143 }
  0xbd   :  { %3411 = vmatprep.subr.msk.bf16.mxu1 %vm5513_vm2, %v771_v58  ;;  %v782_v7 = vsel %vm5513_vm2, %v770_v43, 0  ;;  %vm5520_vm10 = vmmov %vm5517_vm0  ;;  %v902_v51 = vpack.c.bf16 %v896_v17, %v896_v17  ;;  %v1284_v39 = vshra.s32 %v4167_v11, 8  ;;  %vm5530_vm13 = vcmp.lt.s32.totalorder %v4164_v10, 111 }
  0xbe   :  { %v1149_v2 = vsel %vm5530_vm13, %v1144_v45, %v3937_v8  ;;  %v1293_v46 = vstv %s1288_s22  ;;  %vm5533_vm13 = vcmp.le.s32.totalorder %v4183_v21, 14  ;;  %v5534_v8 = vmov 0 }
  0xbf   :  { %3415 = vmatmul.mubr.msk.bf16.vlgmr.msra.gmra.mrb[16].mxu0 %vm5517_vm0, %v3413_v54  ;;  %vm5522_vm0 = vmmov %vm5513_vm2  ;;  %v1283_v43 = vshra.s32 %v4164_v10, 8  ;;  %vm5537_vm5 = vcmask 1041408   ;;  %v1304_v63 = vstv %s3428_s23 }
  0xc0   :  { %1052 = vmatpush1.bf16.msra.mxu0 %v1040_v28  ;;  %1083 = vmatprep.mubr.bf16.mxu0 %v4007_v4  ;;  %vm5540_vm14 = vmmov %vm5537_vm5 }
  0xc1   :  { %3424 = vmatprep.subr.msk.bf16.mxu0 %vm5518_vm3, %v1165_v49  ;;  %vm5521_vm3 = vmmov %vm5513_vm2  ;;  %vm5523_vm2 = vcmp.le.s32.totalorder %v4185_v22, 14 }
  0xc2   :  { %v1172_v32 = vsel %vm5521_vm3, %v1164_v62, 0  ;;  %v1029_v25 = vsel %vm5523_vm2, %v1017_v14, 0.0  ;;  %vm5524_vm3 = vmmov %vm5522_vm0  ;;  %v4015_v14 = vmov 0.0  }
  0xc3   :  { %3407 = vmatmul.mubr.msk.bf16.vlgmr.msra.gmra.mrb[24].mxu1 %vm5520_vm10, %v4487_v34  ;;  %v1014_v34 = vsel %vm5519_vm4, %v3933_v33, %v4460_v15  ;;  %v1035_v58 = vpack.c.bf16 %v1029_v25, %v1029_v25  ;;  %v914_v24 = vsel %vm5524_vm3, %v902_v51, 0  ;;  %vm5526_vm2 = vmmov %vm5520_vm10  ;;  %vm5527_vm4 = vcmp.le.s32.totalorder %v4185_v22, 14  ;;  %v3423_v33 = vld [vmem:[%s5384_s2 + $0x20] sm:$0xf] }
  0xc4   :  { %829 = vmatpush1.bf16.msra.mxu1 %v782_v7  ;;  %860 = vmatprep.mubr.bf16.mxu1 %v4007_v4  ;;  %v5528_v15 = vmov 0 }
  0xc5   :  { %3416 = vmatprep.subr.msk.bf16.mxu1 %vm5522_vm0, %v903_v61  ;;  %vm5525_vm0 = vcmp.le.s32.totalorder %v4183_v21, 14 }
  0xc6   :  { %v1028_v38 = vsel %vm5525_vm0, %v1014_v34, 0.0  ;;  %vm4666_vm0 = vcmp.eq.s32.totalorder %v1284_v39, 0 }
  0xc7   :  { %3420 = vmatmul.mubr.msk.bf16.vlgmr.msra.gmra.mrb[20].mxu0 %vm5520_vm10, %v3418_v42  ;;  %vm4653_vm10 = vmand %vm5527_vm4, %vm4310_vm1  ;;  %v1034_v11 = vpack.c.bf16 %v1028_v38, %v1028_v38  ;;  %v1295_v52 = vsel %vm4666_vm0, %v1293_v46, 0 }
  0xc8   :  { %1184 = vmatpush1.bf16.msra.mxu0 %v1172_v32  ;;  %1215 = vmatprep.mubr.bf16.mxu0 %v4007_v4  ;;  %v5529_v15 = vsel %vm4653_vm10, 4294967295, %v5528_v15  ;;  %vm4675_vm4 = vmand %vm5533_vm13, %vm4367_vm15  ;;  %vm1289_vm13 = vcmp.eq.s32.totalorder %v1283_v43, 0 }
  0xc9   :  { %v5535_v8 = vsel %vm4675_vm4, 4294967295, %v5534_v8  ;;  %v1046_v28 = vsel %vm5537_vm5, %v1034_v11, 0  ;;  %v1294_v17 = vsel %vm1289_vm13, %v1293_v46, 0 }
  0xcb   :  { %3412 = vmatmul.mubr.msk.bf16.vlgmr.msra.gmra.mrb[28].mxu1 %vm5526_vm2, %v4526_v5  ;;  %v1161_v5 = vsel %vm4653_vm10, %v1149_v2, 0.0  ;;  %vm1301_vm10 = vcmp.eq.s32.totalorder %v1284_v39, 1 }
  0xcc   :  { %961 = vmatpush1.bf16.msra.mxu1 %v914_v24  ;;  %992 = vmatprep.mubr.bf16.mxu1 %v4007_v4  ;;  %v1167_v49 = vpack.c.bf16 %v1161_v5, %v1161_v5  ;;  %v1306_v61 = vsel %vm1301_vm10, %v1304_v63, %v1295_v52  ;;  %vm1328_vm10 = vcmask 1042432  }
  0xcd   :  { %3421 = vmatprep.subr.msk.bf16.mxu1 %vm5524_vm3, %v1035_v58  ;;  %vm5536_vm3 = vcmp.lt.s32.totalorder %v4164_v10, 111 }
  0xce   :  { %v1146_v48 = vsel %vm5536_vm3, %v3938_v60, %v1144_v45  ;;  %v1310_v60 = vshrl.u32 %v47_v9, 7  ;;  %vm4695_vm3 = vcmp.eq.s32.totalorder %v1286_v44, 0 }
  0xcf   :  { %3425 = vmatmul.mubr.msk.bf16.vlgmr.msra.gmra.mrb[24].mxu0 %vm5526_vm2, %v3423_v33  ;;  %v1160_v55 = vsel %vm4675_vm4, %v1146_v48, 0.0  ;;  %vm1300_vm4 = vcmp.eq.s32.totalorder %v1283_v43, 1  ;;  %v1297_v9 = vsel %vm4695_vm3, %v1293_v46, 0 }
  0xd0   :  { %1579 = vmatprep.mubr.bf16.mxu0 %v4007_v4  ;;  %v1166_v62 = vpack.c.bf16 %v1160_v55, %v1160_v55  ;;  %vm1312_vm0 = vcmp.eq.s32.totalorder %v1310_v60, %v1306_v61  ;;  %v1305_v32 = vsel %vm1300_vm4, %v1304_v63, %v1294_v17 }
  0xd1   :  { %v3430_v51 = vsel %vm1312_vm0, 1.0, %v4015_v14  ;;  %vm1311_vm13 = vcmp.eq.s32.totalorder %v1310_v60, %v1305_v32 }
  0xd2   :  { %v1178_v13 = vsel %vm5540_vm14, %v1166_v62, 0 }
  0xd3   :  { %3417 = vmatmul.mubr.msk.bf16.vlgmr.msra.gmra.mrb[32].mxu1 %vm5526_vm2, %v3413_v54  ;;  %vm1303_vm2 = vcmp.eq.s32.totalorder %v1286_v44, 1  ;;  %v1285_v54 = vshra.s32 %v4170_v12, 8  ;;  %v3429_v12 = vsel %vm1311_vm13, 1.0, %v4015_v14 }
  0xd4   :  { %1093 = vmatpush1.bf16.msra.mxu1 %v1046_v28  ;;  %1124 = vmatprep.mubr.bf16.mxu1 %v4007_v4  ;;  %v1308_v25 = vsel %vm1303_vm2, %v1304_v63, %v1297_v9  ;;  %vm1324_vm2 = vcmask 23552  }
  0xd5   :  { %3426 = vmatprep.subr.msk.bf16.mxu1 %vm5537_vm5, %v1167_v49  ;;  %vm5541_vm5 = vcmask 31744   ;;  %vm1291_vm14 = vcmp.eq.s32.totalorder %v1285_v54, 0  ;;  %vm1314_vm15 = vcmp.eq.s32.totalorder %v1310_v60, %v1308_v25  ;;  %vm1302_vm3 = vcmp.eq.s32.totalorder %v1285_v54, 1 }
  0xd6   :  { %v1296_v34 = vsel %vm1291_vm14, %v1293_v46, 0  ;;  %v3432_v45 = vsel %vm1314_vm15, 1.0, %v4015_v14  ;;  %vm5542_vm0 = vmmov %vm5541_vm5  ;;  %vm5543_vm15 = vcmp.lt.s32.totalorder %v4164_v10, 16  ;;  %vm5546_vm14 = vcmp.ge.s32.totalorder %v4183_v21, 1 }
  0xd7   :  { %v1307_v58 = vsel %vm1302_vm3, %v1304_v63, %v1296_v34 }
  0xd8   :  { %vm1313_vm4 = vcmp.eq.s32.totalorder %v1310_v60, %v1307_v58 }
  0xd9   :  { %v3431_v24 = vsel %vm1313_vm4, 1.0, %v4015_v14  ;;  %vm5550_vm4 = vcmp.ge.s32.totalorder %v4185_v22, 1 }
  0xdb   :  { %3422 = vmatmul.mubr.msk.bf16.vlgmr.msra.gmra.mrb[36].mxu1 %vm5541_vm5, %v3418_v42  ;;  %v1323_v42 = vld [vmem:[%s5386_s4] sm:$0xff]  ;;  %vm5545_vm5 = vcmp.ge.s32.totalorder %v4179_v19, 1 }
  0xdc   :  { %1225 = vmatpush1.bf16.msra.mxu1 %v1178_v13  ;;  %1256 = vmatprep.mubr.bf16.mxu1 %v4007_v4 }
  0xdd   :  { %3433 = vmatprep.subr.msk.mxu1 %vm1328_vm10, %v3430_v51 }
  0xe3   :  { %3427 = vmatmul.mubr.msk.bf16.vlgmr.msra.gmra.mrb[40].mxu1 %vm5542_vm0, %v3423_v33  ;;  %vm5549_vm0 = vcmp.ge.s32.totalorder %v4181_v20, 1 }
  0xe4   :  { %3434 = vmatpush1.msk.msra.mxu1 %vm1328_vm10, %v3429_v12  ;;  %1405 = vmatprep.mubr.f32.mxu1 %v4015_v14 }
  0xe5   :  { %3436 = vmatprep.subr.msk.mxu1 %vm1328_vm10, %v3432_v45 }
  0xeb   :  { %3435 = vmatmul.mubr.msk.f32.vlgmr.msra.gmra.mrb[44].mxu1 %vm1324_vm2, %v1323_v42 }
  0xec   :  { %3437 = vmatpush1.msk.msra.mxu1 %vm1328_vm10, %v3431_v24  ;;  %1476 = vmatprep.mubr.f32.mxu1 %v4015_v14  ;;  %vm5544_vm10 = vmmov %vm5543_vm15 }
  0xed   :  { %vm5547_vm13 = vmmov %vm5544_vm10 }
  0xee   :  { %vm5548_vm3 = vmmov %vm5544_vm10 }
  0xef   :  { %3438 = vmatmul.mubr.msk.f32.vlgmr.msra.gmra.mrb[46].mxu1 %vm1324_vm2, %v1323_v42  ;;  %vm1534_vm2 = vcmask 1043456  }
  0xf0   :  { %1620 = vmatprep.mubr.bf16.mxu1 %v4007_v4 }
 0x166   :  { %v225_v38 = vpop.f32.mrb[0].mxu1 }
 0x167   :  { %v227_v39 = vpop.f32.mrb[1].mxu1 }
 0x168   :  { %v229_v2 = vpop.f32.mrb[2].mxu1 }
 0x169   :  { %v230_v33 = vpop.f32.mrb[3].mxu1 }
 0x16e   :  { %v266_v11 = vpop.f32.mrb[4].mxu1 }
 0x16f   :  { %v268_v5 = vpop.f32.mrb[5].mxu1 }
 0x170   :  { %v270_v0 = vpop.f32.mrb[6].mxu1 }
 0x171   :  { %v271_v46 = vpop.f32.mrb[7].mxu1 }
 0x172   :  { %v450_v48 = vpop.f32.mrb[0].mxu0 }
 0x173   :  { %v452_v43 = vpop.f32.mrb[1].mxu0 }
 0x174   :  { %v454_v28 = vpop.f32.mrb[2].mxu0 }
 0x175   :  { %v455_v49 = vpop.f32.mrb[3].mxu0 }
 0x176   :  { %v322_v52 = vpop.f32.mrb[8].mxu1 }
 0x177   :  { %v323_v63 = vadd.f32 %v322_v52, %v225_v38  ;;  %v324_v55 = vpop.f32.mrb[9].mxu1 }
 0x178   :  { %v325_v44 = vadd.f32 %v324_v55, %v227_v39  ;;  %v326_v60 = vpop.f32.mrb[10].mxu1 }
 0x179   :  { %v498_v61 = vadd.f32 %v450_v48, %v323_v63  ;;  %v327_v62 = vpop.f32.mrb[11].mxu1 }
 0x17a   :  { %v499_v7 = vadd.f32 %v452_v43, %v325_v44  ;;  %v582_v17 = vpop.f32.mrb[4].mxu0 }
 0x17b   :  { %v630_v13 = vadd.f32 %v582_v17, %v498_v61  ;;  %v584_v9 = vpop.f32.mrb[5].mxu0 }
 0x17c   :  { %v631_v54 = vadd.f32 %v584_v9, %v499_v7  ;;  %v586_v51 = vpop.f32.mrb[6].mxu0 }
 0x17d   :  { %v587_v32 = vpop.f32.mrb[7].mxu0 }
 0x17e   :  { %v363_v25 = vpop.f32.mrb[12].mxu1 }
 0x17f   :  { %v364_v34 = vadd.f32 %v363_v25, %v266_v11  ;;  %v365_v12 = vpop.f32.mrb[13].mxu1 }
 0x180   :  { %v366_v45 = vadd.f32 %v365_v12, %v268_v5  ;;  %v367_v58 = vpop.f32.mrb[14].mxu1 }
 0x181   :  { %v368_v42 = vpop.f32.mrb[15].mxu1 }
 0x182   :  { %v689_v24 = vpop.f32.mrb[8].mxu0 }
 0x183   :  { %v737_v38 = vadd.f32 %v689_v24, %v630_v13  ;;  %v691_v2 = vpop.f32.mrb[9].mxu0 }
 0x184   :  { %v738_v39 = vadd.f32 %v691_v2, %v631_v54  ;;  %v693_v33 = vpop.f32.mrb[10].mxu0 }
 0x185   :  { %v694_v0 = vpop.f32.mrb[11].mxu0 }
 0x186   :  { %v491_v46 = vpop.f32.mrb[16].mxu1 }
 0x187   :  { %v500_v48 = vadd.f32 %v491_v46, %v364_v34  ;;  %v493_v43 = vpop.f32.mrb[17].mxu1 }
 0x188   :  { %v501_v28 = vadd.f32 %v493_v43, %v366_v45  ;;  %v495_v49 = vpop.f32.mrb[18].mxu1 }
 0x189   :  { %v496_v52 = vpop.f32.mrb[19].mxu1 }
 0x18a   :  { %v821_v63 = vpop.f32.mrb[12].mxu0 }
 0x18b   :  { %v869_v55 = vadd.f32 %v821_v63, %v737_v38  ;;  %v823_v44 = vpop.f32.mrb[13].mxu0 }
 0x18c   :  { %v870_v11 = vadd.f32 %v823_v44, %v738_v39  ;;  %v825_v60 = vpop.f32.mrb[14].mxu0 }
 0x18d   :  { %v826_v5 = vpop.f32.mrb[15].mxu0 }
 0x18e   :  { %v623_v61 = vpop.f32.mrb[20].mxu1 }
 0x18f   :  { %v632_v62 = vadd.f32 %v623_v61, %v500_v48  ;;  %v625_v7 = vpop.f32.mrb[21].mxu1 }
 0x190   :  { %v633_v17 = vadd.f32 %v625_v7, %v501_v28  ;;  %v627_v13 = vpop.f32.mrb[22].mxu1 }
 0x191   :  { %v628_v9 = vpop.f32.mrb[23].mxu1 }
 0x192   :  { %v953_v54 = vpop.f32.mrb[16].mxu0 }
 0x193   :  { %v1001_v51 = vadd.f32 %v953_v54, %v869_v55  ;;  %v955_v32 = vpop.f32.mrb[17].mxu0 }
 0x194   :  { %v1002_v25 = vadd.f32 %v955_v32, %v870_v11  ;;  %v957_v34 = vpop.f32.mrb[18].mxu0 }
 0x195   :  { %v958_v12 = vpop.f32.mrb[19].mxu0 }
 0x196   :  { %v730_v45 = vpop.f32.mrb[24].mxu1 }
 0x197   :  { %v739_v58 = vadd.f32 %v730_v45, %v632_v62  ;;  %v732_v42 = vpop.f32.mrb[25].mxu1 }
 0x198   :  { %v740_v24 = vadd.f32 %v732_v42, %v633_v17  ;;  %v734_v38 = vpop.f32.mrb[26].mxu1 }
 0x199   :  { %v735_v2 = vpop.f32.mrb[27].mxu1 }
 0x19a   :  { %v1085_v39 = vpop.f32.mrb[20].mxu0 }
 0x19b   :  { %v1133_v33 = vadd.f32 %v1085_v39, %v1001_v51  ;;  %v1087_v0 = vpop.f32.mrb[21].mxu0 }
 0x19c   :  { %v1134_v46 = vadd.f32 %v1087_v0, %v1002_v25  ;;  %v1089_v48 = vpop.f32.mrb[22].mxu0 }
 0x19d   :  { %v1090_v43 = vpop.f32.mrb[23].mxu0 }
 0x19e   :  { %v862_v28 = vpop.f32.mrb[28].mxu1 }
 0x19f   :  { %v871_v49 = vadd.f32 %v862_v28, %v739_v58  ;;  %v864_v52 = vpop.f32.mrb[29].mxu1 }
 0x1a0   :  { %v872_v63 = vadd.f32 %v864_v52, %v740_v24  ;;  %v866_v55 = vpop.f32.mrb[30].mxu1  ;;  %v1273_v24 = vpop.permute.xlu0 %1272 }
 0x1a1   :  { %v867_v44 = vpop.f32.mrb[31].mxu1 }
 0x1a2   :  { %v1217_v11 = vpop.f32.mrb[24].mxu0 }
 0x1a3   :  { %v1265_v60 = vadd.f32 %v1217_v11, %v1133_v33  ;;  %v1219_v5 = vpop.f32.mrb[25].mxu0 }
 0x1a4   :  { %v1266_v61 = vadd.f32 %v1219_v5, %v1134_v46  ;;  %v1221_v62 = vpop.f32.mrb[26].mxu0 }
 0x1a5   :  { %v1222_v7 = vpop.f32.mrb[27].mxu0  ;;  %v1275_v48 = vadd.f32 %v1273_v24, %v1265_v60 }
 0x1a6   :  { %v994_v17 = vpop.f32.mrb[32].mxu1  ;;  %v1276_v43 = vadd.f32 %v1273_v24, %v1266_v61 }
 0x1a7   :  { %v1003_v13 = vadd.f32 %v994_v17, %v871_v49  ;;  %v996_v9 = vpop.f32.mrb[33].mxu1  ;;  %v1279_v52 = vmax.f32 %v1275_v48, 0.0 }
 0x1a8   :  { %v1004_v54 = vadd.f32 %v996_v9, %v872_v63  ;;  %v998_v51 = vpop.f32.mrb[34].mxu1  ;;  %v1280_v55 = vmax.f32 %v1276_v43, 0.0 }
 0x1a9   :  { %v999_v32 = vpop.f32.mrb[35].mxu1 }
 0x1ae   :  { %v1126_v25 = vpop.f32.mrb[36].mxu1 }
 0x1af   :  { %v1135_v34 = vadd.f32 %v1126_v25, %v1003_v13  ;;  %v1128_v12 = vpop.f32.mrb[37].mxu1 }
 0x1b0   :  { %v1136_v45 = vadd.f32 %v1128_v12, %v1004_v54  ;;  %v1130_v58 = vpop.f32.mrb[38].mxu1  ;;  %v2635_v54 = vld [vmem:[%s5388_s6] sm:$0xff] }
 0x1b1   :  { %v1131_v42 = vpop.f32.mrb[39].mxu1 }
 0x1b6   :  { %v1258_v38 = vpop.f32.mrb[40].mxu1 }
 0x1b7   :  { %v1267_v2 = vadd.f32 %v1258_v38, %v1135_v34  ;;  %v1260_v39 = vpop.f32.mrb[41].mxu1 }
 0x1b8   :  { %v1268_v33 = vadd.f32 %v1260_v39, %v1136_v45  ;;  %v1262_v0 = vpop.f32.mrb[42].mxu1 }
 0x1b9   :  { %v1263_v46 = vpop.f32.mrb[43].mxu1  ;;  %v1277_v28 = vadd.f32 %v1273_v24, %v1267_v2 }
 0x1ba   :  { %v1278_v49 = vadd.f32 %v1273_v24, %v1268_v33 }
 0x1bb   :  { %v1281_v62 = vmax.f32 %v1277_v28, 0.0 }
 0x1bc   :  { %v1282_v7 = vmax.f32 %v1278_v49, 0.0 }
 0x1be   :  { %v1407_v63 = vpop.f32.mrb[44].mxu1 }
 0x1bf   :  { %v4720_v44 = vadd.f32 %v1407_v63, %v1279_v52  ;;  %v1409_v11 = vpop.f32.mrb[45].mxu1 }
 0x1c0   :  { %v4722_v5 = vadd.f32 %v1409_v11, %v1280_v55 }
 0x1c2   :  { %v1478_v17 = vpop.f32.mrb[46].mxu1  ;;  %v3940_v13 = vpack.i.bf16 %v4722_v5, %v4720_v44  ;;  %v1975_v18 = vpack.c.bf16 %v4722_v5, %v4722_v5 }
 0x1c3   :  { %v4726_v9 = vadd.f32 %v1478_v17, %v1281_v62  ;;  %v1480_v60 = vpop.f32.mrb[47].mxu1 }
 0x1c4   :  { %v4728_v61 = vadd.f32 %v1480_v60, %v1282_v7  ;;  %3941 = vrot.lane.b32.xlu1 %v3940_v13, %s4006_s29 }
 0x1c5   :  { %1512 = vrot.lane.b32.xlu0 %v4726_v9, %s4006_s29 }
 0x1c6   :  { %v1977_v36 = vpack.c.bf16 %v4728_v61, %v4728_v61 }
 0x1c8   :  { %1514 = vrot.lane.b32.xlu1 %v4728_v61, %s4006_s29 }
 0x1c9   :  { %1493 = vrot.lane.b32.xlu0 %v4728_v61, %s4008_s1 }
 0x1cc   :  { %3946 = vrot.lane.b32.xlu1 %v3940_v13, %s4008_s1 }
 0x1cd   :  { %3951 = vrot.lane.b32.xlu0 %v3940_v13, %s4009_s30 }
 0x1d0   :  { %1491 = vrot.lane.b32.xlu1 %v4726_v9, %s4008_s1 }
 0x1d1   :  { %1730 = vrot.lane.b32.xlu0 %v4726_v9, %s4009_s30 }
 0x1d4   :  { %1732 = vrot.lane.b32.xlu1 %v4728_v61, %s4009_s30 }
 0x1d5   :  { %1855 = vrot.lane.b32.xlu0 %v4728_v61, %s4010_s13 }
 0x1d8   :  { %3956 = vrot.lane.b32.xlu1 %v3940_v13, %s4010_s13 }
 0x1d9   :  { %3961 = vrot.lane.b32.xlu0 %v3940_v13, %s4011_s14 }
 0x1dc   :  { %1853 = vrot.lane.b32.xlu1 %v4726_v9, %s4010_s13 }
 0x1dd   :  { %2085 = vrot.lane.b32.xlu0 %v4728_v61, %s4011_s14 }
 0x1e0   :  { %2083 = vrot.lane.b32.xlu1 %v4726_v9, %s4011_s14 }
 0x1e1   :  { %2206 = vrot.lane.b32.xlu0 %v4726_v9, %s4012_s15 }
 0x1e4   :  { %3966 = vrot.lane.b32.xlu1 %v3940_v13, %s4012_s15 }
 0x1e5   :  { %3971 = vrot.lane.b32.xlu0 %v3940_v13, %s4013_s16 }
 0x1e8   :  { %2208 = vrot.lane.b32.xlu1 %v4728_v61, %s4012_s15 }
 0x1e9   :  { %2331 = vrot.lane.b32.xlu0 %v4728_v61, %s4013_s16 }
 0x1ec   :  { %2329 = vrot.lane.b32.xlu1 %v4726_v9, %s4013_s16 }
 0x1ed   :  { %2452 = vrot.lane.b32.xlu0 %v4726_v9, %s4014_s17 }
 0x1f0   :  { %3976 = vrot.lane.b32.xlu1 %v3940_v13, %s4014_s17  ;;  %v3439_v13 = vld [vmem:[%s5387_s5 + $0x4] sm:$0xf] }
 0x1f1   :  { %2638 = vperm.xlu0 %3939, %v2635_v54  }
 0x1f4   :  { %2454 = vrot.lane.b32.xlu1 %v4728_v61, %s4014_s17 }
 0x236   :  { %v3942_v51 = vpop.permute.xlu1 %3941 }
 0x237   :  { %v3944_v32 = vunpack.i.h.bf16 %v3942_v51  ;;  %v3943_v25 = vunpack.i.l.bf16 %v3942_v51  ;;  %v1513_v34 = vpop.permute.xlu0 %1512 }
 0x239   :  { %v1518_v12 = vsel %vm5543_vm15, %v3943_v25, %v3944_v32  ;;  %v1517_v45 = vsel %vm5544_vm10, %v3944_v32, %v1513_v34  ;;  %vm1530_vm15 = vcmask 64512   ;;  %vm5551_vm10 = vcmp.lt.s32.totalorder %v4164_v10, 17 }
 0x23a   :  { %v1521_v58 = vsel %vm5545_vm5, %v1518_v12, 0.0  ;;  %v1522_v42 = vsel %vm5546_vm14, %v1517_v45, 0.0  ;;  %v1515_v24 = vpop.permute.xlu1 %1514  ;;  %vm5552_vm5 = vmmov %vm5551_vm10  ;;  %vm5553_vm14 = vcmp.lt.s32.totalorder %v4164_v10, 15 }
 0x23b   :  { %v1528_v38 = vpack.c.bf16 %v1522_v42, %v1522_v42  ;;  %v1516_v2 = vsel %vm5547_vm13, %v1513_v34, %v1515_v24  ;;  %v1519_v39 = vsel %vm5548_vm3, %v1515_v24, %v3943_v25  ;;  %v1494_v33 = vpop.permute.xlu0 %1493  ;;  %v1527_v0 = vpack.c.bf16 %v1521_v58, %v1521_v58 }
 0x23c   :  { %v1520_v46 = vsel %vm5549_vm0, %v1519_v39, 0.0  ;;  %v1523_v48 = vsel %vm5550_vm4, %v1516_v2, 0.0  ;;  %vm5554_vm13 = vnez %v5435_v53  ;;  %vm5555_vm3 = vnez %v5445_v16  ;;  %vm5556_vm0 = vmmov %vm5552_vm5 }
 0x23d   :  { %v1526_v43 = vpack.c.bf16 %v1520_v46, %v1520_v46  ;;  %v1529_v28 = vpack.c.bf16 %v1523_v48, %v1523_v48  ;;  %3440 = vmatprep.subr.msk.bf16.mxu0 %vm1534_vm2, %v1527_v0  ;;  %v1542_v62 = vsel %vm1534_vm2, %v1528_v38, 0  ;;  %vm5557_vm4 = vmmov %vm5556_vm0 }
 0x23e   :  { %v3947_v49 = vpop.permute.xlu1 %3946 }
 0x23f   :  { %v3949_v52 = vunpack.i.h.bf16 %v3947_v49  ;;  %v3948_v63 = vunpack.i.l.bf16 %v3947_v49  ;;  %v3952_v55 = vpop.permute.xlu0 %3951  ;;  %3442 = vmatprep.subr.msk.bf16.mxu1 %vm1534_vm2, %v1529_v28  ;;  %v1536_v11 = vsel %vm1534_vm2, %v1526_v43, 0 }
 0x240   :  { %v3954_v7 = vunpack.i.h.bf16 %v3952_v55  ;;  %v3953_v17 = vunpack.i.l.bf16 %v3952_v55  ;;  %1548 = vmatpush1.bf16.msra.mxu0 %v1536_v11  ;;  %1589 = vmatpush1.bf16.msra.mxu1 %v1542_v62 }
 0x241   :  { %v1497_v60 = vsel %vm5551_vm10, %v3948_v63, %v3949_v52  ;;  %v1498_v54 = vsel %vm5552_vm5, %v1494_v33, %v3948_v63  ;;  %vm5559_vm10 = vmmov %vm5553_vm14 }
 0x242   :  { %v1500_v51 = vsel %vm4221_vm9, %v1497_v60, 0.0  ;;  %v1736_v32 = vsel %vm5553_vm14, %v3953_v17, %v3954_v7  ;;  %v1492_v25 = vpop.permute.xlu1 %1491  ;;  %v1499_v34 = vsel %vm5554_vm13, %v1498_v54, 0.0  ;;  %vm5558_vm9 = vnez %v5443_v6 }
 0x243   :  { %v1739_v12 = vsel %vm5555_vm3, %v1736_v32, 0.0  ;;  %v1495_v45 = vsel %vm5556_vm0, %v1492_v25, %v1494_v33  ;;  %v1496_v58 = vsel %vm5557_vm4, %v3949_v52, %v1492_v25  ;;  %v1731_v42 = vpop.permute.xlu0 %1730  ;;  %3441 = vmatmul.mubr.msk.bf16.vlgmr.msra.gmra.mrb[28].mxu0 %vm1530_vm15, %v3439_v13  ;;  %3443 = vmatmul.mubr.msk.bf16.vlgmr.msra.gmra.mrb[48].mxu1 %vm1530_vm15, %v3439_v13  ;;  %v1505_v41 = vpack.c.bf16 %v1500_v51, %v1500_v51 }
 0x244   :  { %v1501_v24 = vsel %vm4326_vm7, %v1496_v58, 0.0  ;;  %v1502_v53 = vsel %vm5558_vm9, %v1495_v45, 0.0  ;;  %v1504_v16 = vpack.c.bf16 %v1499_v34, %v1499_v34  ;;  %1676 = vmatprep.mubr.bf16.mxu0 %v4007_v4  ;;  %1717 = vmatprep.mubr.bf16.mxu1 %v4007_v4  ;;  %v1735_v39 = vsel %vm5559_vm10, %v3954_v7, %v1731_v42  ;;  %vm5560_vm7 = vmmov %vm5559_vm10 }
 0x245   :  { %v1506_v38 = vpack.c.bf16 %v1501_v24, %v1501_v24  ;;  %v1507_v2 = vpack.c.bf16 %v1502_v53, %v1502_v53  ;;  %3444 = vmatprep.subr.msk.bf16.mxu0 %vm1534_vm2, %v1505_v41  ;;  %v1745_v33 = vpack.c.bf16 %v1739_v12, %v1739_v12  ;;  %vm5561_vm5 = vmmov %vm5560_vm7  ;;  %v1740_v43 = vsel %vm4394_vm6, %v1735_v39, 0.0  ;;  %v3448_v24 = vld [vmem:[%s5387_s5 + $0x8] sm:$0xf] }
 0x246   :  { %v1733_v0 = vpop.permute.xlu1 %1732  ;;  %v1633_v35 = vsel %vm1534_vm2, %v1504_v16, 0  ;;  %vm5562_vm14 = vnez %v5449_v23  ;;  %vm5563_vm13 = vnez %v5459_v37  ;;  %v1746_v55 = vpack.c.bf16 %v1740_v43, %v1740_v43  ;;  %v3453_v43 = vld [vmem:[%s5387_s5 + $0xc] sm:$0xf] }
 0x247   :  { %v1734_v6 = vsel %vm5560_vm7, %v1731_v42, %v1733_v0  ;;  %v1737_v46 = vsel %vm5561_vm5, %v1733_v0, %v3953_v17  ;;  %1645 = vmatpush1.bf16.msra.mxu0 %v1633_v35  ;;  %3446 = vmatprep.subr.msk.bf16.mxu1 %vm1534_vm2, %v1507_v2  ;;  %v1639_v48 = vsel %vm1534_vm2, %v1506_v38, 0  ;;  %vm5564_vm6 = vcmp.lt.s32.totalorder %v4164_v10, 1  ;;  %v1856_v37 = vpop.permute.xlu0 %1855 }
 0x248   :  { %v1738_v28 = vsel %vm5562_vm14, %v1737_v46, 0.0  ;;  %v1741_v49 = vsel %vm5563_vm13, %v1734_v6, 0.0  ;;  %3449 = vmatprep.subr.msk.bf16.mxu0 %vm1534_vm2, %v1745_v33  ;;  %1686 = vmatpush1.bf16.msra.mxu1 %v1639_v48  ;;  %vm5565_vm3 = vnez %v5429_v30  ;;  %vm5566_vm0 = vmmov %vm5564_vm6  ;;  %v1758_v51 = vsel %vm1534_vm2, %v1746_v55, 0 }
 0x249   :  { %v1747_v52 = vpack.c.bf16 %v1741_v49, %v1741_v49  ;;  %v1744_v11 = vpack.c.bf16 %v1738_v28, %v1738_v28  ;;  %vm5567_vm4 = vmmov %vm5566_vm0  ;;  %v1974_v0 = vpack.c.bf16 %v4720_v44, %v4720_v44  ;;  %v1976_v35 = vpack.c.bf16 %v4726_v9, %v4726_v9 }
 0x24a   :  { %v3957_v63 = vpop.permute.xlu1 %3956  ;;  %vm5568_vm9 = vmmov %vm5566_vm0  ;;  %vm5574_vm7 = vnez %v5464_v50  ;;  %vm5575_vm5 = vnez %v5441_v3  ;;  %vm5576_vm14 = vcmp.lt.s32.totalorder %v4164_v10, 113  ;;  %v3458_v3 = vld [vmem:[%s5387_s5 + $0x10] sm:$0xf] }
 0x24b   :  { %v3959_v62 = vunpack.i.h.bf16 %v3957_v63  ;;  %v3958_v7 = vunpack.i.l.bf16 %v3957_v63  ;;  %3451 = vmatprep.subr.msk.bf16.mxu1 %vm1534_vm2, %v1747_v52  ;;  %v1752_v54 = vsel %vm1534_vm2, %v1744_v11, 0  ;;  %v3962_v41 = vpop.permute.xlu0 %3961  ;;  %v1982_v44 = vsel %vm1534_vm2, %v1974_v0, 0  ;;  %vm5577_vm13 = vmmov %vm5576_vm14 }
 0x24c   :  { %v3964_v39 = vunpack.i.h.bf16 %v3962_v41  ;;  %v3963_v33 = vunpack.i.l.bf16 %v3962_v41  ;;  %v1988_v9 = vsel %vm1534_vm2, %v1976_v35, 0 }
 0x24d   :  { %v1859_v23 = vsel %vm5564_vm6, %v3958_v7, %v3959_v62  ;;  %v1860_v30 = vsel %vm5567_vm4, %v1856_v37, %v3958_v7  ;;  %vm5578_vm6 = vnez %v5478_v57 }
 0x24e   :  { %v1862_v17 = vsel %vm5565_vm3, %v1859_v23, 0.0  ;;  %v1854_v13 = vpop.permute.xlu1 %1853  ;;  %v1861_v45 = vsel %vm4209_vm8, %v1860_v30, 0.0  ;;  %vm5569_vm8 = vcmp.lt.s32.totalorder %v4164_v10, 127  ;;  %vm5579_vm3 = vnez %v5505_v40 }
 0x24f   :  { %v1857_v60 = vsel %vm5566_vm0, %v1854_v13, %v1856_v37  ;;  %3445 = vmatmul.mubr.msk.bf16.vlgmr.msra.gmra.mrb[28].mxu0 %vm1530_vm15, %v1503_v29  ;;  %3447 = vmatmul.mubr.msk.bf16.vlgmr.msra.gmra.mrb[48].mxu1 %vm1530_vm15, %v1503_v29  ;;  %v1868_v32 = vpack.c.bf16 %v1862_v17, %v1862_v17  ;;  %v1858_v34 = vsel %vm5568_vm9, %v3959_v62, %v1854_v13  ;;  %v2086_v38 = vpop.permute.xlu0 %2085  ;;  %vm5580_vm0 = vmmov %vm5577_vm13 }
 0x250   :  { %v1864_v25 = vsel %vm4250_vm11, %v1857_v60, 0.0  ;;  %1764 = vmatpush1.bf16.msra.mxu0 %v1752_v54  ;;  %1805 = vmatpush1.bf16.msra.mxu1 %v1758_v51  ;;  %v1863_v56 = vsel %vm4295_vm12, %v1858_v34, 0.0  ;;  %v1867_v42 = vpack.c.bf16 %v1861_v45, %v1861_v45  ;;  %v2090_v5 = vsel %vm5569_vm8, %v2086_v38, %v3963_v33  ;;  %vm5570_vm11 = vmmov %vm5569_vm8 }
 0x251   :  { %v1870_v12 = vpack.c.bf16 %v1864_v25, %v1864_v25  ;;  %3454 = vmatprep.subr.msk.bf16.mxu0 %vm1534_vm2, %v1868_v32  ;;  %1795 = vmatprep.mubr.bf16.mxu0 %v4007_v4  ;;  %v1869_v58 = vpack.c.bf16 %v1863_v56, %v1863_v56  ;;  %v2094_v6 = vsel %vm4310_vm1, %v2090_v5, 0.0  ;;  %vm5571_vm12 = vnez %v5439_v59  ;;  %vm5572_vm1 = vmmov %vm5569_vm8 }
 0x252   :  { %1836 = vmatprep.mubr.bf16.mxu1 %v4007_v4  ;;  %v1875_v53 = vsel %vm1534_vm2, %v1867_v42, 0  ;;  %v2084_v2 = vpop.permute.xlu1 %2083  ;;  %v2100_v28 = vpack.c.bf16 %v2094_v6, %v2094_v6  ;;  %v2089_v59 = vsel %vm5572_vm1, %v3963_v33, %v3964_v39  ;;  %vm5573_vm10 = vmmov %vm5572_vm1  ;;  %vm5582_vm9 = vnez %v5515_v27 }
 0x253   :  { %3456 = vmatprep.subr.msk.bf16.mxu1 %vm1534_vm2, %v1870_v12  ;;  %v1881_v16 = vsel %vm1534_vm2, %v1869_v58, 0  ;;  %v2088_v61 = vsel %vm5570_vm11, %v3964_v39, %v2084_v2  ;;  %v2087_v26 = vsel %vm5573_vm10, %v2084_v2, %v2086_v38  ;;  %v2207_v63 = vpop.permute.xlu0 %2206  ;;  %v2091_v7 = vsel %vm5575_vm5, %v2089_v59, 0.0  ;;  %vm5581_vm4 = vmmov %vm5580_vm0 }
 0x254   :  { %v2092_v46 = vsel %vm5571_vm12, %v2088_v61, 0.0  ;;  %v2093_v62 = vsel %vm5574_vm7, %v2087_v26, 0.0  ;;  %v2097_v17 = vpack.c.bf16 %v2091_v7, %v2091_v7  ;;  %vm5583_vm8 = vnez %v5484_v31  ;;  %v3463_v31 = vld [vmem:[%s5387_s5 + $0x14] sm:$0xf]  ;;  %v2588_v7 = vld [vmem:[%s5391_s9 + $0x88] sm:$0xff] }
 0x255   :  { %v2098_v49 = vpack.c.bf16 %v2092_v46, %v2092_v46  ;;  %v2099_v37 = vpack.c.bf16 %v2093_v62, %v2093_v62  ;;  %vm5584_vm11 = vcmp.lt.s32.totalorder %v4164_v10, 112  ;;  %vm5586_vm1 = vcmp.le.s32.totalorder %v4185_v22, 14 }
 0x256   :  { %v3967_v48 = vpop.permute.xlu1 %3966  ;;  %v2105_v51 = vsel %vm1534_vm2, %v2097_v17, 0  ;;  %vm5585_vm12 = vmmov %vm5584_vm11  ;;  %vm5587_vm10 = vcmp.le.s32.totalorder %v4179_v19, 14 }
 0x257   :  { %v3969_v52 = vunpack.i.h.bf16 %v3967_v48  ;;  %v3968_v11 = vunpack.i.l.bf16 %v3967_v48  ;;  %v3972_v60 = vpop.permute.xlu0 %3971  ;;  %v2111_v32 = vsel %vm1534_vm2, %v2099_v37, 0  ;;  %vm5588_vm7 = vmmov %vm5584_vm11 }
 0x258   :  { %v3974_v12 = vunpack.i.h.bf16 %v3972_v60  ;;  %v3973_v56 = vunpack.i.l.bf16 %v3972_v60  ;;  %vm5589_vm5 = vmmov %vm5588_vm7  ;;  %v2571_v60 = vld [vmem:[%s5391_s9] sm:$0xff] }
 0x259   :  { %v2211_v29 = vsel %vm5576_vm14, %v3969_v52, %v2207_v63  ;;  %v2212_v57 = vsel %vm5580_vm0, %v3968_v11, %v3969_v52  ;;  %vm5590_vm14 = vcmp.le.s32.totalorder %v4183_v21, 14  ;;  %vm5594_vm0 = vnez %v5500_v1  ;;  %v3468_v21 = vld [vmem:[%s5387_s5 + $0x18] sm:$0xf] }
 0x25a   :  { %v2209_v55 = vpop.permute.xlu1 %2208  ;;  %v2215_v13 = vsel %vm5578_vm6, %v2211_v29, 0.0  ;;  %v2214_v58 = vsel %vm5583_vm8, %v2212_v57, 0.0  ;;  %v2335_v19 = vsel %vm5588_vm7, %v3973_v56, %v3974_v12  ;;  %vm5592_vm6 = vcmp.lt.s32.totalorder %v4164_v10, 111  ;;  %v2619_v29 = vld [vmem:[%s5391_s9 + $0x180] sm:$0xff] }
 0x25b   :  { %3450 = vmatmul.mubr.msk.bf16.vlgmr.msra.gmra.mrb[28].mxu0 %vm1530_vm15, %v3448_v24  ;;  %3452 = vmatmul.mubr.msk.bf16.vlgmr.msra.gmra.mrb[48].mxu1 %vm1530_vm15, %v3448_v24  ;;  %v2213_v23 = vsel %vm5577_vm13, %v2209_v55, %v3968_v11  ;;  %v2221_v25 = vpack.c.bf16 %v2215_v13, %v2215_v13  ;;  %v2210_v40 = vsel %vm5581_vm4, %v2207_v63, %v2209_v55  ;;  %v2332_v30 = vpop.permute.xlu0 %2331  ;;  %vm5591_vm13 = vcmp.le.s32.totalorder %v4181_v20, 14  ;;  %v2587_v55 = vld [vmem:[%s5391_s9 + $0x80] sm:$0xff] }
 0x25c   :  { %1887 = vmatpush1.bf16.msra.mxu0 %v1875_v53  ;;  %1928 = vmatpush1.bf16.msra.mxu1 %v1881_v16  ;;  %v2217_v54 = vsel %vm5579_vm3, %v2213_v23, 0.0  ;;  %v2216_v45 = vsel %vm5582_vm9, %v2210_v40, 0.0  ;;  %v2336_v42 = vsel %vm5584_vm11, %v2332_v30, %v3973_v56  ;;  %v2220_v53 = vpack.c.bf16 %v2214_v58, %v2214_v58  ;;  %vm5593_vm3 = vmmov %vm5592_vm6  ;;  %v3478_v57 = vld [vmem:[%s5387_s5 + $0x20] sm:$0xf]  ;;  %v2605_v58 = vld [vmem:[%s5391_s9 + $0x110] sm:$0xff] }
 0x25d   :  { %3459 = vmatprep.subr.msk.bf16.mxu0 %vm1534_vm2, %v1975_v18  ;;  %3461 = vmatprep.subr.msk.bf16.mxu1 %vm1534_vm2, %v1977_v36  ;;  %v2223_v50 = vpack.c.bf16 %v2217_v54, %v2217_v54  ;;  %v2222_v24 = vpack.c.bf16 %v2216_v45, %v2216_v45  ;;  %v2340_v16 = vsel %vm5586_vm1, %v2336_v42, 0.0  ;;  %v2337_v6 = vsel %vm5591_vm13, %v2335_v19, 0.0  ;;  %vm5596_vm9 = vmmov %vm5593_vm3  ;;  %v2572_v54 = vld [vmem:[%s5391_s9 + $0x8] sm:$0xff]  ;;  %v2606_v42 = vld [vmem:[%s5391_s9 + $0x118] sm:$0xff] }
 0x25e   :  { %1918 = vmatprep.mubr.bf16.mxu0 %v4007_v4  ;;  %1959 = vmatprep.mubr.bf16.mxu1 %v4007_v4  ;;  %v2330_v34 = vpop.permute.xlu1 %2329  ;;  %v2346_v27 = vpack.c.bf16 %v2340_v16, %v2340_v16  ;;  %v2228_v2 = vsel %vm1534_vm2, %v2220_v53, 0  ;;  %vm5595_vm4 = vnez %v5529_v15  ;;  %vm5597_vm8 = vmmov %vm5593_vm3  ;;  %vm5598_vm11 = vnez %v5535_v8  ;;  %v2620_v8 = vld [vmem:[%s5391_s9 + $0x188] sm:$0xff]  ;;  %v2623_v53 = vld [vmem:[%s5391_s9 + $0x1a0] sm:$0xff] }
 0x25f   :  { %v2334_v41 = vsel %vm5585_vm12, %v3974_v12, %v2330_v34  ;;  %v2234_v39 = vsel %vm1534_vm2, %v2222_v24, 0  ;;  %v2333_v22 = vsel %vm5589_vm5, %v2330_v34, %v2332_v30  ;;  %v2453_v35 = vpop.permute.xlu0 %2452  ;;  %vm5599_vm12 = vnez %v5510_v47  ;;  %v3473_v47 = vld [vmem:[%s5387_s5 + $0x1c] sm:$0xf]  ;;  %v2573_v34 = vld [vmem:[%s5391_s9 + $0x10] sm:$0xff]  ;;  %v2592_v24 = vld [vmem:[%s5391_s9 + $0xa8] sm:$0xff] }
 0x260   :  { %v2338_v18 = vsel %vm5587_vm10, %v2334_v41, 0.0  ;;  %v2339_v0 = vsel %vm5590_vm14, %v2333_v22, 0.0  ;;  %v3696_v23 = vpack.c.bf16 %v2588_v7, %v2587_v55  ;;  %v3728_v37 = vpack.c.bf16 %v2620_v8, %v2619_v29  ;;  %v2574_v12 = vld [vmem:[%s5391_s9 + $0x18] sm:$0xff]  ;;  %v2591_v41 = vld [vmem:[%s5391_s9 + $0xa0] sm:$0xff]  ;;  %v2624_v16 = vld [vmem:[%s5391_s9 + $0x1a8] sm:$0xff] }
 0x261   :  { %v2344_v38 = vpack.c.bf16 %v2338_v18, %v2338_v18  ;;  %v3698_v40 = vpack.c.bf16 %v2572_v54, %v2571_v60  ;;  %v3702_v18 = vpack.c.bf16 %v2574_v12, %v2573_v34  ;;  %v2608_v19 = vld [vmem:[%s5391_s9 + $0x128] sm:$0xff]  ;;  %v2593_v22 = vld [vmem:[%s5391_s9 + $0xb0] sm:$0xff]  ;;  %v2611_v55 = vld [vmem:[%s5391_s9 + $0x140] sm:$0xff]  ;;  %vm4016_vm1 = vmmov 0  }
 0x262   :  { %v3977_v36 = vpop.permute.xlu1 %3976  ;;  %v2598_v7 = vld [vmem:[%s5391_s9 + $0xd8] sm:$0xff]  ;;  %v2629_v29 = vld [vmem:[%s5391_s9 + $0x1d0] sm:$0xff] }
 0x263   :  { %v3979_v33 = vunpack.i.h.bf16 %v3977_v36  ;;  %v3978_v61 = vunpack.i.l.bf16 %v3977_v36  ;;  %v3734_v36 = vpack.c.bf16 %v2606_v42, %v2605_v58  ;;  %v2630_v8 = vld [vmem:[%s5391_s9 + $0x1d8] sm:$0xff]  ;;  %v2613_v54 = vld [vmem:[%s5391_s9 + $0x150] sm:$0xff] }
 0x264   :  { %v3748_v60 = vpack.c.bf16 %v2630_v8, %v2629_v29  ;;  %v2601_v58 = vld [vmem:[%s5391_s9 + $0xf0] sm:$0xff]  ;;  %v2602_v42 = vld [vmem:[%s5391_s9 + $0xf8] sm:$0xff] }
 0x265   :  { %v2457_v46 = vsel %vm5592_vm6, %v3979_v33, %v2453_v35  ;;  %v2458_v1 = vsel %vm5596_vm9, %v3978_v61, %v3979_v33  ;;  %v2594_v33 = vld [vmem:[%s5391_s9 + $0xb8] sm:$0xff] }
 0x266   :  { %v2455_v5 = vpop.permute.xlu1 %2454  ;;  %v2460_v63 = vsel %vm5599_vm12, %v2458_v1, 0.0  ;;  %v2579_v1 = vld [vmem:[%s5391_s9 + $0x40] sm:$0xff]  ;;  %v3272_v8 = vld [vmem:[%s5392_s10 + $0x18] sm:$0xff] }
 0x267   :  { %3455 = vmatmul.mubr.msk.bf16.vlgmr.msra.gmra.mrb[28].mxu0 %vm1530_vm15, %v3453_v43  ;;  %3457 = vmatmul.mubr.msk.bf16.vlgmr.msra.gmra.mrb[48].mxu1 %vm1530_vm15, %v3453_v43  ;;  %v2459_v48 = vsel %vm5593_vm3, %v2455_v5, %v3978_v61  ;;  %v2345_v43 = vpack.c.bf16 %v2339_v0, %v2339_v0  ;;  %v2456_v15 = vsel %vm5597_vm8, %v2453_v35, %v2455_v5  ;;  %v2625_v5 = vld [vmem:[%s5391_s9 + $0x1b0] sm:$0xff]  ;;  %v2626_v61 = vld [vmem:[%s5391_s9 + $0x1b8] sm:$0xff] }
 0x268   :  { %1994 = vmatpush1.bf16.msra.mxu0 %v1982_v44  ;;  %2035 = vmatpush1.bf16.msra.mxu1 %v1988_v9  ;;  %v2463_v44 = vsel %vm5595_vm4, %v2459_v48, 0.0  ;;  %v2462_v52 = vsel %vm5598_vm11, %v2456_v15, 0.0  ;;  %v2466_v62 = vpack.c.bf16 %v2460_v63, %v2460_v63  ;;  %v3708_v48 = vpack.c.bf16 %v2594_v33, %v2593_v22  ;;  %v2580_v15 = vld [vmem:[%s5391_s9 + $0x48] sm:$0xff] }
 0x269   :  { %3464 = vmatprep.subr.msk.bf16.mxu0 %vm1534_vm2, %v2098_v49  ;;  %3466 = vmatprep.subr.msk.bf16.mxu1 %vm1534_vm2, %v2100_v28  ;;  %v2343_v28 = vpack.c.bf16 %v2337_v6, %v2337_v6  ;;  %v2461_v49 = vsel %vm5594_vm0, %v2457_v46, 0.0  ;;  %v2469_v20 = vpack.c.bf16 %v2463_v44, %v2463_v44  ;;  %v2357_v59 = vsel %vm1534_vm2, %v2345_v43, 0  ;;  %v2577_v6 = vld [vmem:[%s5391_s9 + $0x30] sm:$0xff]  ;;  %v2578_v46 = vld [vmem:[%s5391_s9 + $0x38] sm:$0xff]  ;;  %v2595_v44 = vld [vmem:[%s5391_s9 + $0xc0] sm:$0xff] }
 0x26a   :  { %2025 = vmatprep.mubr.bf16.mxu0 %v4007_v4  ;;  %2066 = vmatprep.mubr.bf16.mxu1 %v4007_v4  ;;  %v2467_v26 = vpack.c.bf16 %v2461_v49, %v2461_v49  ;;  %v2468_v11 = vpack.c.bf16 %v2462_v52, %v2462_v52  ;;  %v2474_v17 = vsel %vm1534_vm2, %v2466_v62, 0  ;;  %v3740_v43 = vpack.c.bf16 %v2626_v61, %v2625_v5  ;;  %v2610_v49 = vld [vmem:[%s5391_s9 + $0x138] sm:$0xff]  ;;  %v2597_v62 = vld [vmem:[%s5391_s9 + $0xd0] sm:$0xff] }
 0x26b   :  { %v2351_v9 = vsel %vm1534_vm2, %v2343_v28, 0  ;;  %v2609_v28 = vld [vmem:[%s5391_s9 + $0x130] sm:$0xff] }
 0x26c   :  { %v2480_v13 = vsel %vm1534_vm2, %v2468_v11, 0  ;;  %v2612_v11 = vld [vmem:[%s5391_s9 + $0x148] sm:$0xff] }
 0x273   :  { %3460 = vmatmul.mubr.msk.bf16.vlgmr.msra.gmra.mrb[28].mxu0 %vm1530_vm15, %v3458_v3  ;;  %3462 = vmatmul.mubr.msk.bf16.vlgmr.msra.gmra.mrb[48].mxu1 %vm1530_vm15, %v3458_v3  ;;  %v2603_v3 = vld [vmem:[%s5391_s9 + $0x100] sm:$0xff] }
 0x274   :  { %2117 = vmatpush1.bf16.msra.mxu0 %v2105_v51  ;;  %2158 = vmatpush1.bf16.msra.mxu1 %v2111_v32  ;;  %v2590_v51 = vld [vmem:[%s5391_s9 + $0x98] sm:$0xff]  ;;  %v2621_v32 = vld [vmem:[%s5391_s9 + $0x190] sm:$0xff] }
 0x275   :  { %3469 = vmatprep.subr.msk.bf16.mxu0 %vm1534_vm2, %v2221_v25  ;;  %3471 = vmatprep.subr.msk.bf16.mxu1 %vm1534_vm2, %v2223_v50  ;;  %v2604_v50 = vld [vmem:[%s5391_s9 + $0x108] sm:$0xff]  ;;  %v2622_v25 = vld [vmem:[%s5391_s9 + $0x198] sm:$0xff] }
 0x276   :  { %2148 = vmatprep.mubr.bf16.mxu0 %v4007_v4  ;;  %2189 = vmatprep.mubr.bf16.mxu1 %v4007_v4  ;;  %v3730_v30 = vpack.c.bf16 %v2604_v50, %v2603_v3  ;;  %v3732_v45 = vpack.c.bf16 %v2622_v25, %v2621_v32  ;;  %v2614_v3 = vld [vmem:[%s5391_s9 + $0x158] sm:$0xff]  ;;  %v2599_v50 = vld [vmem:[%s5391_s9 + $0xe0] sm:$0xff]  ;;  %v2632_v32 = vld [vmem:[%s5391_s9 + $0x1e8] sm:$0xff] }
 0x27f   :  { %3465 = vmatmul.mubr.msk.bf16.vlgmr.msra.gmra.mrb[28].mxu0 %vm1530_vm15, %v3463_v31  ;;  %3467 = vmatmul.mubr.msk.bf16.vlgmr.msra.gmra.mrb[48].mxu1 %vm1530_vm15, %v3463_v31  ;;  %v2575_v31 = vld [vmem:[%s5391_s9 + $0x20] sm:$0xff] }
 0x280   :  { %2240 = vmatpush1.bf16.msra.mxu0 %v2228_v2  ;;  %2281 = vmatpush1.bf16.msra.mxu1 %v2234_v39  ;;  %v3736_v2 = vpack.c.bf16 %v2624_v16, %v2623_v53  ;;  %v2607_v39 = vld [vmem:[%s5391_s9 + $0x120] sm:$0xff] }
 0x281   :  { %3474 = vmatprep.subr.msk.bf16.mxu0 %vm1534_vm2, %v2344_v38  ;;  %3476 = vmatprep.subr.msk.bf16.mxu1 %vm1534_vm2, %v2346_v27  ;;  %v2576_v27 = vld [vmem:[%s5391_s9 + $0x28] sm:$0xff]  ;;  %v3704_v38 = vpack.c.bf16 %v2592_v24, %v2591_v41  ;;  %v3738_v35 = vpack.c.bf16 %v2608_v19, %v2607_v39  ;;  %v2633_v41 = vld [vmem:[%s5391_s9 + $0x1f0] sm:$0xff]  ;;  %v2634_v24 = vld [vmem:[%s5391_s9 + $0x1f8] sm:$0xff] }
 0x282   :  { %2271 = vmatprep.mubr.bf16.mxu0 %v4007_v4  ;;  %2312 = vmatprep.mubr.bf16.mxu1 %v4007_v4  ;;  %v3706_v0 = vpack.c.bf16 %v2576_v27, %v2575_v31  ;;  %v2585_v31 = vld [vmem:[%s5391_s9 + $0x70] sm:$0xff]  ;;  %v2586_v27 = vld [vmem:[%s5391_s9 + $0x78] sm:$0xff] }
 0x283   :  { %v2618_v39 = vld [vmem:[%s5391_s9 + $0x178] sm:$0xff] }
 0x28b   :  { %3470 = vmatmul.mubr.msk.bf16.vlgmr.msra.gmra.mrb[28].mxu0 %vm1530_vm15, %v3468_v21  ;;  %3472 = vmatmul.mubr.msk.bf16.vlgmr.msra.gmra.mrb[48].mxu1 %vm1530_vm15, %v3468_v21  ;;  %v2596_v21 = vld [vmem:[%s5391_s9 + $0xc8] sm:$0xff] }
 0x28c   :  { %2363 = vmatpush1.bf16.msra.mxu0 %v2351_v9  ;;  %2404 = vmatpush1.bf16.msra.mxu1 %v2357_v59  ;;  %v2628_v9 = vld [vmem:[%s5391_s9 + $0x1c8] sm:$0xff]  ;;  %v3710_v59 = vpack.c.bf16 %v2578_v46, %v2577_v6  ;;  %v3712_v52 = vpack.c.bf16 %v2596_v21, %v2595_v44 }
 0x28d   :  { %3479 = vmatprep.subr.msk.bf16.mxu0 %vm1534_vm2, %v2467_v26  ;;  %3481 = vmatprep.subr.msk.bf16.mxu1 %vm1534_vm2, %v2469_v20  ;;  %v2627_v20 = vld [vmem:[%s5391_s9 + $0x1c0] sm:$0xff]  ;;  %v3742_v26 = vpack.c.bf16 %v2610_v49, %v2609_v28 }
 0x28e   :  { %2394 = vmatprep.mubr.bf16.mxu0 %v4007_v4  ;;  %2435 = vmatprep.mubr.bf16.mxu1 %v4007_v4  ;;  %v3744_v63 = vpack.c.bf16 %v2628_v9, %v2627_v20  ;;  %v2639_v20 = vpop.permute.xlu0 %2638 }
 0x297   :  { %3475 = vmatmul.mubr.msk.bf16.vlgmr.msra.gmra.mrb[28].mxu0 %vm1530_vm15, %v3473_v47  ;;  %3477 = vmatmul.mubr.msk.bf16.vlgmr.msra.gmra.mrb[48].mxu1 %vm1530_vm15, %v3473_v47  ;;  %v3714_v47 = vpack.c.bf16 %v2580_v15, %v2579_v1 }
 0x298   :  { %2486 = vmatpush1.bf16.msra.mxu0 %v2474_v17  ;;  %2527 = vmatpush1.bf16.msra.mxu1 %v2480_v13  ;;  %v2582_v17 = vld [vmem:[%s5391_s9 + $0x58] sm:$0xff]  ;;  %v3716_v13 = vpack.c.bf16 %v2598_v7, %v2597_v62  ;;  %v3271_v62 = vld [vmem:[%s5392_s10 + $0x10] sm:$0xff]  ;;  %v4023_v7 = vmov 0.0|0.0  }
 0x299   :  { %2517 = vmatprep.mubr.bf16.mxu0 %v4007_v4  ;;  %2558 = vmatprep.mubr.bf16.mxu1 %v4007_v4  ;;  %v2589_v4 = vld [vmem:[%s5391_s9 + $0x90] sm:$0xff] }
 0x29a   :  { %3697 = vmatprep.subr.bf16.mxu0 %v3696_v23  ;;  %3729 = vmatprep.subr.bf16.mxu1 %v3728_v37  ;;  %v3700_v56 = vpack.c.bf16 %v2590_v51, %v2589_v4  ;;  %v3746_v23 = vpack.c.bf16 %v2612_v11, %v2611_v55  ;;  %v2581_v37 = vld [vmem:[%s5391_s9 + $0x50] sm:$0xff]  ;;  %v2600_v4 = vld [vmem:[%s5391_s9 + $0xe8] sm:$0xff]  ;;  %v2631_v51 = vld [vmem:[%s5391_s9 + $0x1e0] sm:$0xff] }
 0x29b   :  { %v3718_v25 = vpack.c.bf16 %v2582_v17, %v2581_v37  ;;  %v3720_v34 = vpack.c.bf16 %v2600_v4, %v2599_v50  ;;  %v3752_v12 = vpack.c.bf16 %v2632_v32, %v2631_v51  ;;  %v3269_v55 = vld [vmem:[%s5392_s10] sm:$0xff]  ;;  %v3270_v11 = vld [vmem:[%s5392_s10 + $0x8] sm:$0xff]  ;;  %v98_v32 = vand.u32 7, %v4164_v10 }
 0x29c   :  { %v3761_v29 = vpack.c.bf16 %v3270_v11, %v3269_v55  ;;  %v3274_v37 = vld [vmem:[%s5392_s10 + $0x28] sm:$0xff]  ;;  %v3277_v50 = vld [vmem:[%s5392_s10 + $0x40] sm:$0xff] }
 0x29d   :  { %v3278_v4 = vld [vmem:[%s5392_s10 + $0x48] sm:$0xff]  ;;  %vm5260_vm7 = vcmp.ge.s32.totalorder %v98_v32, 1  ;;  %vm5287_vm14 = vcmp.le.s32.totalorder %v98_v32, 6 }
 0x2a3   :  { %3480 = vmatmul.mubr.msk.bf16.vlgmr.msra.gmra.mrb[28].mxu0 %vm1530_vm15, %v3478_v57  ;;  %3482 = vmatmul.mubr.msk.bf16.vlgmr.msra.gmra.mrb[48].mxu1 %vm1530_vm15, %v3478_v57  ;;  %v3750_v57 = vpack.c.bf16 %v2614_v3, %v2613_v54  ;;  %v96_v54 = vand.u32 63, %v4164_v10  ;;  %v3281_v10 = vld [vmem:[%s5392_s10 + $0x60] sm:$0xff] }
 0x2a4   :  { %3699 = vmatpush3.bf16.msra.mxu0 %v3698_v40  ;;  %3731 = vmatpush3.bf16.msra.mxu1 %v3730_v30  ;;  %v2583_v40 = vld [vmem:[%s5391_s9 + $0x60] sm:$0xff]  ;;  %v2584_v30 = vld [vmem:[%s5391_s9 + $0x68] sm:$0xff] }
 0x2a5   :  { %3701 = vmatprep.subr.bf16.mxu0 %v3700_v56  ;;  %3733 = vmatprep.subr.bf16.mxu1 %v3732_v45  ;;  %v2615_v56 = vld [vmem:[%s5391_s9 + $0x160] sm:$0xff]  ;;  %v2616_v45 = vld [vmem:[%s5391_s9 + $0x168] sm:$0xff]  ;;  %v3722_v53 = vpack.c.bf16 %v2584_v30, %v2583_v40  ;;  %v5250_v51 = vshra.s32 %v96_v54, 3  ;;  %v3280_v40 = vld [vmem:[%s5392_s10 + $0x58] sm:$0xff] }
 0x2a6   :  { %v3754_v16 = vpack.c.bf16 %v2616_v45, %v2615_v56 }
 0x2a7   :  { %vm99_vm10 = vcmp.ge.s32.totalorder %v5250_v51, 1  ;;  %vm100_vm6 = vcmp.le.s32.totalorder %v5250_v51, 6 }
 0x2a8   :  { %3703 = vmatpush3.bf16.msra.mxu0 %v3702_v18  ;;  %3735 = vmatpush3.bf16.msra.mxu1 %v3734_v36  ;;  %v3724_v18 = vpack.c.bf16 %v2602_v42, %v2601_v58  ;;  %v3756_v36 = vpack.c.bf16 %v2634_v24, %v2633_v41  ;;  %vm103_vm5 = vmand %vm99_vm10, %vm5260_vm7  ;;  %v3283_v42 = vld [vmem:[%s5392_s10 + $0x70] sm:$0xff]  ;;  %v3284_v41 = vld [vmem:[%s5392_s10 + $0x78] sm:$0xff] }
 0x2a9   :  { %3705 = vmatprep.subr.bf16.mxu0 %v3704_v38  ;;  %3737 = vmatprep.subr.bf16.mxu1 %v3736_v2  ;;  %v2617_v38 = vld [vmem:[%s5391_s9 + $0x170] sm:$0xff]  ;;  %v3726_v2 = vpack.c.bf16 %v2586_v27, %v2585_v31  ;;  %s4017_s9 = smov 9   ;;  %v3483_v27 = vld [vmem:[%s5389_s7 + $0x4] sm:$0xf]  ;;  %vm104_vm13 = vmand %vm99_vm10, %vm5287_vm14 }
 0x2aa   :  { %v3758_v19 = vpack.c.bf16 %v2618_v39, %v2617_v38  ;;  %vm105_vm3 = vmand %vm100_vm6, %vm5260_vm7 }
 0x2ab   :  { %vm106_vm0 = vmand %vm100_vm6, %vm5287_vm14 }
 0x2ac   :  { %3707 = vmatpush3.bf16.msra.mxu0 %v3706_v0  ;;  %3739 = vmatpush3.bf16.msra.mxu1 %v3738_v35 }
 0x2ad   :  { %3709 = vmatprep.subr.bf16.mxu0 %v3708_v48  ;;  %3741 = vmatprep.subr.bf16.mxu1 %v3740_v43 }
 0x2b0   :  { %3711 = vmatpush3.bf16.msra.mxu0 %v3710_v59  ;;  %3743 = vmatpush3.bf16.msra.mxu1 %v3742_v26 }
 0x2b1   :  { %3713 = vmatprep.subr.bf16.mxu0 %v3712_v52  ;;  %3745 = vmatprep.subr.bf16.mxu1 %v3744_v63 }
 0x2b4   :  { %3715 = vmatpush3.bf16.msra.mxu0 %v3714_v47  ;;  %3747 = vmatpush3.bf16.msra.mxu1 %v3746_v23  ;;  %v3764_v47 = vpack.c.bf16 %v3272_v8, %v3271_v62  ;;  %v3273_v23 = vld [vmem:[%s5392_s10 + $0x20] sm:$0xff]  ;;  %v3494_v62 = vld [vmem:[%s5389_s7 + $0x18] sm:$0xf] }
 0x2b5   :  { %3717 = vmatprep.subr.bf16.mxu0 %v3716_v13  ;;  %3749 = vmatprep.subr.bf16.mxu1 %v3748_v60  ;;  %v3767_v17 = vpack.c.bf16 %v3274_v37, %v3273_v23  ;;  %v3275_v13 = vld [vmem:[%s5392_s10 + $0x30] sm:$0xff]  ;;  %v3276_v60 = vld [vmem:[%s5392_s10 + $0x38] sm:$0xff] }
 0x2b6   :  { %v3770_v3 = vpack.c.bf16 %v3276_v60, %v3275_v13  ;;  %v3496_v23 = vld [vmem:[%s5389_s7 + $0x1c] sm:$0xf]  ;;  %v3285_v13 = vld [vmem:[%s5390_s8] sm:$0xff] }
 0x2b8   :  { %3719 = vmatpush3.bf16.msra.mxu0 %v3718_v25  ;;  %3751 = vmatpush3.bf16.msra.mxu1 %v3750_v57  ;;  %v3773_v25 = vpack.c.bf16 %v3278_v4, %v3277_v50  ;;  %v3279_v57 = vld [vmem:[%s5392_s10 + $0x50] sm:$0xff] }
 0x2b9   :  { %3721 = vmatprep.subr.bf16.mxu0 %v3720_v34  ;;  %3753 = vmatprep.subr.bf16.mxu1 %v3752_v12  ;;  %v3776_v34 = vpack.c.bf16 %v3280_v40, %v3279_v57  ;;  %v3282_v12 = vld [vmem:[%s5392_s10 + $0x68] sm:$0xff] }
 0x2ba   :  { %v3779_v56 = vpack.c.bf16 %v3282_v12, %v3281_v10 }
 0x2bc   :  { %3723 = vmatpush3.bf16.msra.mxu0 %v3722_v53  ;;  %3755 = vmatpush3.bf16.msra.mxu1 %v3754_v16 }
 0x2bd   :  { %3725 = vmatprep.subr.bf16.mxu0 %v3724_v18  ;;  %3757 = vmatprep.subr.bf16.mxu1 %v3756_v36  ;;  %v3782_v18 = vpack.c.bf16 %v3284_v41, %v3283_v42 }
 0x2c0   :  { %3727 = vmatpush3.bf16.msra.mxu0 %v3726_v2  ;;  %3759 = vmatpush3.bf16.msra.mxu1 %v3758_v19 }
 0x2c1   :  { %3607 = vmatprep.subr.bf16.mxu0 %v4015_v14  ;;  %3760 = vmatprep.subr.bf16.mxu1 %v4023_v7 }
 0x376   :  { %v2519_v22 = vpop.f32.mrb[28].mxu0  ;;  %v2560_v33 = vpop.f32.mrb[48].mxu1 }
 0x377   :  { %v2521_v5 = vpop.f32.mrb[29].mxu0  ;;  %v2562_v61 = vpop.f32.mrb[49].mxu1 }
 0x378   :  { %v2523_v0 = vpop.f32.mrb[30].mxu0  ;;  %v2564_v35 = vpop.f32.mrb[50].mxu1  ;;  %2705 = vmatprep.mubr.f32.mxu0 %v2521_v5  ;;  %2775 = vmatprep.mubr.f32.mxu1 %v2562_v61 }
 0x379   :  { %v2524_v6 = vpop.f32.mrb[31].mxu0  ;;  %v2565_v46 = vpop.f32.mrb[51].mxu1  ;;  %2706 = vmatmul.mubr.f32.vlgmr.msra.gmra.mrb[32].mxu0 %v2519_v22  ;;  %2776 = vmatmul.mubr.f32.vlgmr.msra.gmra.mrb[52].mxu1 %v2560_v33  ;;  %v2787_v33 = vld [vmem:[%s5389_s7] sm:$0xf] }
 0x37a   :  { %3609 = vmatprep.mubr.msk.bf16.mxu0 %vm4016_vm1, %v4015_v14  ;;  %3693 = vmatprep.mubr.msk.f32.mxu1 %vm4016_vm1, %v4015_v14  ;;  %v3486_v6 = vld [vmem:[%s5389_s7 + $0x8] sm:$0xf] }
 0x37b   :  { %3762 = vmatpush3.bf16.msra.mxu1 %v3761_v29 }
 0x37c   :  { %3763 = vmatprep.subr.bf16.mxu1 %v4023_v7 }
 0x37f   :  { %3765 = vmatpush3.bf16.msra.mxu1 %v3764_v47 }
 0x380   :  { %3766 = vmatprep.subr.bf16.mxu1 %v4023_v7 }
 0x383   :  { %3768 = vmatpush3.bf16.msra.mxu1 %v3767_v17  ;;  %v3498_v17 = vld [vmem:[%s5389_s7 + $0x20] sm:$0xf] }
 0x384   :  { %3769 = vmatprep.subr.bf16.mxu1 %v4023_v7 }
 0x387   :  { %3771 = vmatpush3.bf16.msra.mxu1 %v3770_v3 }
 0x388   :  { %3772 = vmatprep.subr.bf16.mxu1 %v4023_v7 }
 0x38b   :  { %3774 = vmatpush3.bf16.msra.mxu1 %v3773_v25 }
 0x38c   :  { %3775 = vmatprep.subr.bf16.mxu1 %v4023_v7 }
 0x38f   :  { %3777 = vmatpush3.bf16.msra.mxu1 %v3776_v34 }
 0x390   :  { %3778 = vmatprep.subr.bf16.mxu1 %v4023_v7 }
 0x393   :  { %3780 = vmatpush3.bf16.msra.mxu1 %v3779_v56 }
 0x394   :  { %3781 = vmatprep.subr.bf16.mxu1 %v4023_v7 }
 0x397   :  { %3783 = vmatpush3.bf16.msra.mxu1 %v3782_v18 }
 0x44c   :  { %v3534_v48 = vpop.f32.mrb[32].mxu0  ;;  %v3569_v43 = vpop.f32.mrb[52].mxu1 }
 0x44d   :  { %v3535_v28 = vpop.f32.mrb[33].mxu0  ;;  %v3570_v49 = vpop.f32.mrb[53].mxu1 }
 0x44e   :  { %v3536_v44 = vadd.f32 %v3535_v28, %v3534_v48  ;;  %v3571_v21 = vadd.f32 %v3570_v49, %v3569_v43  ;;  %v3488_v43 = vld [vmem:[%s5389_s7 + $0xc] sm:$0xf] }
 0x450   :  { %v2708_v9 = vadd.f32 %v3536_v44, %v2639_v20  ;;  %v3490_v20 = vld [vmem:[%s5389_s7 + $0x10] sm:$0xf] }
 0x452   :  { %v2778_v59 = vadd.f32 %v3571_v21, %v2708_v9 }
 0x454   :  { %v5203_v26 = vmax.f32 %v2778_v59, 0.0 }
 0x456   :  { %v3500_v1 = vmul.f32 -1.442695, %v5203_v26  ;;  %2782 = vrot.lane.b32.xlu0 %v5203_v26, %s4017_s9  ;;  %2789 = vrot.lane.b32.xlu1 %v5203_v26, %s4018_s18  ;;  %v3001_v48 = vpack.c.bf16 %v5203_v26, %v5203_v26 }
 0x458   :  { %3983 = vpow2.f32 %v3500_v1  ;;  %v3006_v28 = vsel %vm1534_vm2, %v3001_v48, 0 }
 0x45a   :  { %2944 = vrot.lane.b32.xlu0 %v5203_v26, %s4010_s13  ;;  %2889 = vrot.lane.b32.xlu1 %v5203_v26, %s4019_s19 }
 0x45e   :  { %3104 = vrot.lane.b32.xlu0 %v5203_v26, %s4020_s3  ;;  %3049 = vrot.lane.b32.xlu1 %v5203_v26, %s4011_s14 }
 0x462   :  { %v3984_v15 = vpop.eup %3983  ;;  %3214 = vrot.lane.b32.xlu0 %v5203_v26, %s4021_s20  ;;  %3159 = vrot.lane.b32.xlu1 %v5203_v26, %s4022_s21 }
 0x463   :  { %v3364_v52 = vadd.f32 1.0, %v3984_v15  ;;  %v3492_v15 = vld [vmem:[%s5389_s7 + $0x14] sm:$0xf] }
 0x465   :  { %3985 = vrcp.f32 %v3364_v52 }
 0x466   :  { %3288 = vperm.xlu1 %3980, %v3285_v13  }
 0x46f   :  { %v3986_v63 = vpop.eup %3985 }
 0x470   :  { %3373 = vst [vmem:[%s5393_s11] sm:$0xff] %v3986_v63 }
 0x4c8   :  { %v2783_v45 = vpop.permute.xlu0 %2782  ;;  %v2790_v58 = vpop.permute.xlu1 %2789 }
 0x4c9   :  { %v2786_v24 = vsel %vm103_vm5, %v2783_v45, 0.0  ;;  %v2793_v53 = vsel %vm99_vm10, %v2790_v58, 0.0 }
 0x4ca   :  { %v2796_v16 = vpack.c.bf16 %v2793_v53, %v2793_v53  ;;  %v2788_v36 = vpack.c.bf16 %v2786_v24, %v2786_v24 }
 0x4cc   :  { %v2801_v31 = vsel %vm1534_vm2, %v2796_v16, 0  ;;  %v2847_v2 = vsel %vm1534_vm2, %v2788_v36, 0  ;;  %v2890_v39 = vpop.permute.xlu1 %2889  ;;  %v2945_v61 = vpop.permute.xlu0 %2944 }
 0x4cd   :  { %3608 = vmatpush3.bf16.msra.mxu0 %v2801_v31  ;;  %v2893_v19 = vsel %vm104_vm13, %v2890_v39, 0.0  ;;  %v2948_v0 = vsel %vm5260_vm7, %v2945_v61, 0.0 }
 0x4ce   :  { %3613 = vmatprep.subr.bf16.mxu0 %v4015_v14  ;;  %v2896_v22 = vpack.c.bf16 %v2893_v19, %v2893_v19  ;;  %v2951_v35 = vpack.c.bf16 %v2948_v0, %v2948_v0 }
 0x4d0   :  { %3610 = vmatmul.mubr.msk.bf16.vlgmr.msra.gmra.mrb[36].mxu0 %vm1530_vm15, %v3483_v27  ;;  %v2901_v5 = vsel %vm1534_vm2, %v2896_v22, 0  ;;  %v2956_v46 = vsel %vm1534_vm2, %v2951_v35, 0  ;;  %v3050_v49 = vpop.permute.xlu1 %3049  ;;  %v3105_v59 = vpop.permute.xlu0 %3104 }
 0x4d1   :  { %3614 = vmatpush3.bf16.msra.mxu0 %v2847_v2  ;;  %3615 = vmatprep.mubr.msk.bf16.mxu0 %vm4016_vm1, %v4015_v14  ;;  %v3053_v44 = vsel %vm5287_vm14, %v3050_v49, 0.0  ;;  %v3108_v26 = vsel %vm105_vm3, %v3105_v59, 0.0 }
 0x4d2   :  { %3619 = vmatprep.subr.bf16.mxu0 %v4015_v14  ;;  %v3056_v21 = vpack.c.bf16 %v3053_v44, %v3053_v44  ;;  %v3111_v1 = vpack.c.bf16 %v3108_v26, %v3108_v26 }
 0x4d4   :  { %v3061_v9 = vsel %vm1534_vm2, %v3056_v21, 0  ;;  %v3116_v52 = vsel %vm1534_vm2, %v3111_v1, 0  ;;  %v3160_v63 = vpop.permute.xlu1 %3159  ;;  %v3215_v29 = vpop.permute.xlu0 %3214 }
 0x4d5   :  { %v3163_v55 = vsel %vm100_vm6, %v3160_v63, 0.0  ;;  %v3218_v8 = vsel %vm106_vm0, %v3215_v29, 0.0 }
 0x4d6   :  { %v3166_v11 = vpack.c.bf16 %v3163_v55, %v3163_v55  ;;  %v3221_v47 = vpack.c.bf16 %v3218_v8, %v3218_v8 }
 0x4d8   :  { %v3171_v7 = vsel %vm1534_vm2, %v3166_v11, 0  ;;  %v3226_v37 = vsel %vm1534_vm2, %v3221_v47, 0  ;;  %vm3374_vm2 = vcmask 261120  }
 0x4dc   :  { %3616 = vmatmul.mubr.msk.bf16.vlgmr.msra.gmra.mrb[36].mxu0 %vm1530_vm15, %v2787_v33 }
 0x4dd   :  { %3620 = vmatpush3.bf16.msra.mxu0 %v2901_v5  ;;  %3621 = vmatprep.mubr.msk.bf16.mxu0 %vm4016_vm1, %v4015_v14 }
 0x4de   :  { %3625 = vmatprep.subr.bf16.mxu0 %v4015_v14 }
 0x4e5   :  { %v3289_v4 = vpop.permute.xlu1 %3288 }
 0x4e8   :  { %3622 = vmatmul.mubr.msk.bf16.vlgmr.msra.gmra.mrb[36].mxu0 %vm1530_vm15, %v3486_v6 }
 0x4e9   :  { %3626 = vmatpush3.bf16.msra.mxu0 %v2956_v46  ;;  %3627 = vmatprep.mubr.msk.bf16.mxu0 %vm4016_vm1, %v4015_v14 }
 0x4ea   :  { %3631 = vmatprep.subr.bf16.mxu0 %v4015_v14 }
 0x4f4   :  { %3628 = vmatmul.mubr.msk.bf16.vlgmr.msra.gmra.mrb[36].mxu0 %vm1530_vm15, %v3488_v43 }
 0x4f5   :  { %3632 = vmatpush3.bf16.msra.mxu0 %v3006_v28  ;;  %3633 = vmatprep.mubr.msk.bf16.mxu0 %vm4016_vm1, %v4015_v14 }
 0x4f6   :  { %3637 = vmatprep.subr.bf16.mxu0 %v4015_v14 }
 0x500   :  { %3634 = vmatmul.mubr.msk.bf16.vlgmr.msra.gmra.mrb[36].mxu0 %vm1530_vm15, %v3490_v20 }
 0x501   :  { %3638 = vmatpush3.bf16.msra.mxu0 %v3061_v9  ;;  %3639 = vmatprep.mubr.msk.bf16.mxu0 %vm4016_vm1, %v4015_v14 }
 0x502   :  { %3643 = vmatprep.subr.bf16.mxu0 %v4015_v14 }
 0x50c   :  { %3640 = vmatmul.mubr.msk.bf16.vlgmr.msra.gmra.mrb[36].mxu0 %vm1530_vm15, %v3492_v15 }
 0x50d   :  { %3644 = vmatpush3.bf16.msra.mxu0 %v3116_v52  ;;  %3645 = vmatprep.mubr.msk.bf16.mxu0 %vm4016_vm1, %v4015_v14 }
 0x50e   :  { %3649 = vmatprep.subr.bf16.mxu0 %v4015_v14 }
 0x518   :  { %3646 = vmatmul.mubr.msk.bf16.vlgmr.msra.gmra.mrb[36].mxu0 %vm1530_vm15, %v3494_v62 }
 0x519   :  { %3650 = vmatpush3.bf16.msra.mxu0 %v3171_v7  ;;  %3651 = vmatprep.mubr.msk.bf16.mxu0 %vm4016_vm1, %v4015_v14 }
 0x51a   :  { %3655 = vmatprep.subr.bf16.mxu0 %v4015_v14 }
 0x524   :  { %3652 = vmatmul.mubr.msk.bf16.vlgmr.msra.gmra.mrb[36].mxu0 %vm1530_vm15, %v3496_v23 }
 0x525   :  { %3656 = vmatpush3.bf16.msra.mxu0 %v3226_v37  ;;  %3657 = vmatprep.mubr.msk.bf16.mxu0 %vm4016_vm1, %v4015_v14 }
 0x530   :  { %3658 = vmatmul.mubr.msk.bf16.vlgmr.msra.gmra.mrb[36].mxu0 %vm1530_vm15, %v3498_v17 }
 0x603   :  { %v3262_v60 = vpop.f32.mrb[36].mxu0 }
 0x604   :  { %v3659_v54 = vpop.f32.mrb[37].mxu0  ;;  %3694 = vmatmul.mubr.f32.vlgmr.msra.gmra.mrb[54].mxu1 %v3262_v60 }
 0x605   :  { %v3265_v3 = vpop.f32.mrb[38].mxu0 }
 0x606   :  { %v3660_v50 = vpop.f32.mrb[39].mxu0 }
 0x6d7   :  { %v3357_v51 = vpop.f32.mrb[54].mxu1 }
 0x6d8   :  { %v3358_v32 = vadd.f32 %v3357_v51, %v3289_v4  ;;  %v3695_v14 = vpop.f32.mrb[55].mxu1 }
 0x6da   :  { %v3501_v25 = vmul.f32 -1.442695, %v3358_v32 }
 0x6dc   :  { %3987 = vpow2.f32 %v3501_v25 }
 0x6e6   :  { %v3988_v57 = vpop.eup %3987 }
 0x6e7   :  { %v3370_v40 = vadd.f32 1.0, %v3988_v57 }
 0x6e9   :  { %3989 = vrcp.f32 %v3370_v40 }
 0x6f3   :  { %v3990_v30 = vpop.eup %3989 }
 0x6f4   :  { %3375 = vst.msk [vmem:[%s5394_s12] sm:$0xff] %vm3374_vm2, %v3990_v30 }

</bundles_post_ra>
